<compile_context>
chip_gen: v6e
topology: v6e:2x2x1
jax: 0.10.0
libtpu: 0.0.40
codegen_flags: <defaults>
</compile_context>

<pallas_src>
import jax
import jax.numpy as jnp
from jax.experimental import pallas as pl
from jax.experimental.pallas import tpu as pltpu

H1 = 128   # padded fc1 width      (100 -> 128)
H2 = 256   # padded fc2/fc3 width  (200 -> 256)
TP = 128   # padded time width     (tem_size=60 -> 128)


# ----------------------------------------------------------------------------
# Fused kernel: BN x3 -> fc1..fc4 (+ReLU) -> conv-slice-sum epilogue.
# ----------------------------------------------------------------------------
def _fused_kernel(xw_ref, xd_ref, xr_ref,
                  w1a_ref, w1b_ref, w1c_ref, b1_ref,
                  w2_ref, b2_ref, w3_ref, b3_ref, w4_ref, b4_ref,
                  wc_ref, bc_ref,
                  aa_ref, out_ref):
    # ---- BatchNorm2d(affine=False), training-mode biased batch stats (C==1).
    def bn(x):
        mean = jnp.mean(x, keepdims=True)
        var = jnp.mean((x - mean) ** 2, keepdims=True)   # biased, like PyTorch
        return (x - mean) * jax.lax.rsqrt(var + 1e-5)

    xw = bn(xw_ref[...])            # [M, week]
    xd = bn(xd_ref[...])            # [M, day]
    xr = bn(xr_ref[...])            # [M, recent]

    # ---- fc1(cat(xw, xd, xr)) without materializing the concat. ----
    h = (jnp.dot(xw, w1a_ref[...], preferred_element_type=jnp.float32)
         + jnp.dot(xd, w1b_ref[...], preferred_element_type=jnp.float32)
         + jnp.dot(xr, w1c_ref[...], preferred_element_type=jnp.float32)
         + b1_ref[...])
    h = jnp.maximum(h, 0.0)
    h = jnp.maximum(jnp.dot(h, w2_ref[...], preferred_element_type=jnp.float32)
                    + b2_ref[...], 0.0)
    h = jnp.maximum(jnp.dot(h, w3_ref[...], preferred_element_type=jnp.float32)
                    + b3_ref[...], 0.0)
    aa = jnp.maximum(jnp.dot(h, w4_ref[...], preferred_element_type=jnp.float32)
                     + b4_ref[...], 0.0)          # [M, TP]; cols >= 60 are 0
    aa_ref[...] = aa                              # y1 (lane-dense 128 store)

    # TODO(synk): PHYSICS_DECODER (physics_layer / physics_decode) is not
    # defined in the provided source; both stages are identity pass-throughs,
    # so the conv-sum epilogue consumes `aa` directly.
    out_ref[...] = (jnp.dot(aa, wc_ref[...], preferred_element_type=jnp.float32)
                    + bc_ref[...])                # cols 0..5 meaningful


# ----------------------------------------------------------------------------
# Full HSPGCN_L forward (thin JAX glue around the single fused kernel).
# ----------------------------------------------------------------------------
def hspgcn_l_forward(params, x_w, x_w_mask, x_d, x_d_mask, x_r, x_r_mask,
                     train_t_mask, supports):
    B, C, N, week = x_w.shape
    day, recent = x_d.shape[-1], x_r.shape[-1]
    tem_size = week + day + recent
    assert C == 1, "Conv2d(1, 1, kernel_size=1) stage requires 1 channel"
    assert tem_size == 60, "final time slicing requires tem_size == 60"
    M = B * N

    # C == 1 -> pure reshapes, no transpose / extra HBM pass.
    xw2 = x_w.reshape(M, week)
    xd2 = x_d.reshape(M, day)
    xr2 = x_r.reshape(M, recent)

    def full(shape):
        return pl.BlockSpec(shape, lambda i: (0,) * len(shape))

    p = params
    operands = (xw2, xd2, xr2,
                p["w1a"], p["w1b"], p["w1c"], p["b1"],
                p["w2"], p["b2"], p["w3"], p["b3"], p["w4"], p["b4"],
                p["wc"], p["bc"])

    aa_pad, out_pad = pl.pallas_call(
        _fused_kernel,
        out_shape=(jax.ShapeDtypeStruct((M, TP), jnp.float32),   # y1 (padded)
                   jax.ShapeDtypeStruct((M, TP), jnp.float32)),  # out (padded)
        grid=(1,),
        in_specs=[full(op.shape) for op in operands],
        out_specs=(full((M, TP)), full((M, TP))),
        compiler_params=pltpu.CompilerParams(
            dimension_semantics=("arbitrary",)),
    )(*operands)

    aa = aa_pad[:, :tem_size].reshape(B, C, N, tem_size)

    # TODO(synk): PHYSICS_DECODER undefined -> identity pass-through:
    # y1 = aa, d_adj = t_adj = supports, ff = train_t_mask.
    y1, d_adj, t_adj, ff = aa, supports, supports, train_t_mask

    out = out_pad[:, :6].reshape(B, N, 6)
    return out, d_adj, ff, y1


# ----------------------------------------------------------------------------
# Deterministic parameter construction (PyTorch default-like uniform init),
# pre-padded / pre-folded for the fused kernel.
# ----------------------------------------------------------------------------
def build_params(week, day, recent, key):
    tem_size = week + day + recent
    ks = jax.random.split(key, 10)

    def linear(kw, kb, fan_in, fan_out, pad_in, pad_out):
        bound = 1.0 / float(fan_in) ** 0.5
        W = jax.random.uniform(kw, (fan_in, fan_out), jnp.float32, -bound, bound)
        b = jax.random.uniform(kb, (fan_out,), jnp.float32, -bound, bound)
        Wp = jnp.zeros((pad_in, pad_out), jnp.float32).at[:fan_in, :fan_out].set(W)
        bp = jnp.zeros((1, pad_out), jnp.float32).at[0, :fan_out].set(b)
        return Wp, bp

    w1, b1 = linear(ks[0], ks[1], tem_size, 100, tem_size, H1)
    w1a, w1b, w1c = w1[:week], w1[week:week + day], w1[week + day:]
    w2, b2 = linear(ks[2], ks[3], 100, 200, H1, H2)
    w3, b3 = linear(ks[4], ks[5], 200, 200, H2, H2)
    w4, b4 = linear(ks[6], ks[7], 200, tem_size, H2, TP)

    # Conv2d(1, 1, k=1, bias=True): scalar weight/bias, fan_in=1 -> U(-1, 1).
    # conv1 serves slices 0/3/6, conv2 -> 1/4/7, conv3 -> 2/5/8, conv4 -> 9
    # (exactly the reuse pattern of the PyTorch forward). Fold the ten
    # slice-convs + sum into one sparse matmul wc and one bias constant.
    cw = jax.random.uniform(ks[8], (4,), jnp.float32, -1.0, 1.0)
    cb = jax.random.uniform(ks[9], (4,), jnp.float32, -1.0, 1.0)
    conv_idx = jnp.array([0, 1, 2, 0, 1, 2, 0, 1, 2, 3], jnp.int32)
    rows = jnp.arange(tem_size)
    wc = (jnp.zeros((TP, TP), jnp.float32)
          .at[rows, rows % 6].set(cw[conv_idx][rows // 6]))
    bias_total = 3.0 * (cb[0] + cb[1] + cb[2]) + cb[3]
    bc = jnp.zeros((1, TP), jnp.float32).at[0, :6].set(bias_total)

    return dict(w1a=w1a, w1b=w1b, w1c=w1c, b1=b1, w2=w2, b2=b2,
                w3=w3, b3=b3, w4=w4, b4=b4, wc=wc, bc=bc)


if __name__ == "__main__":
    # Shapes consistent with the module: tem_size must be 60 for the final
    # slicing and c_in must be 1 for the Conv2d(1,1) stage.
    B, C, N = 2, 1, 16
    week = day = recent = 20
    tem_size = week + day + recent                # 60

    key = jax.random.PRNGKey(0)
    k = jax.random.split(key, 4)
    x_w = jax.random.normal(k[0], (B, C, N, week), jnp.float32)
    x_d = jax.random.normal(k[1], (B, C, N, day), jnp.float32)
    x_r = jax.random.normal(k[2], (B, C, N, recent), jnp.float32)
    x_w_mask = jnp.ones((B, C, N, week), jnp.float32)
    x_d_mask = jnp.ones((B, C, N, day), jnp.float32)
    x_r_mask = jnp.ones((B, C, N, recent), jnp.float32)
    train_t_mask = jnp.ones((B, N, tem_size), jnp.float32)
    supports = jax.random.uniform(k[3], (N, N), jnp.float32)

    params = build_params(week, day, recent, jax.random.PRNGKey(42))

    fwd = jax.jit(hspgcn_l_forward)
    out, d_adj, ff, y1 = fwd(params, x_w, x_w_mask, x_d, x_d_mask,
                             x_r, x_r_mask, train_t_mask, supports)
    jax.block_until_ready((out, d_adj, ff, y1))

    assert out.shape == (B, N, 6)
    assert y1.shape == (B, C, N, tem_size)
    print("KERNEL_OK")
</pallas_src>

<mosaic_0001>
module attributes {stable_mosaic.version = 11 : i64} {
  func.func @_fused_kernel(%arg0: i32, %arg1: memref<32x20xf32, #tpu.memory_space<vmem>>, %arg2: memref<32x20xf32, #tpu.memory_space<vmem>>, %arg3: memref<32x20xf32, #tpu.memory_space<vmem>>, %arg4: memref<20x128xf32, #tpu.memory_space<vmem>>, %arg5: memref<20x128xf32, #tpu.memory_space<vmem>>, %arg6: memref<20x128xf32, #tpu.memory_space<vmem>>, %arg7: memref<1x128xf32, #tpu.memory_space<vmem>>, %arg8: memref<128x256xf32, #tpu.memory_space<vmem>>, %arg9: memref<1x256xf32, #tpu.memory_space<vmem>>, %arg10: memref<256x256xf32, #tpu.memory_space<vmem>>, %arg11: memref<1x256xf32, #tpu.memory_space<vmem>>, %arg12: memref<256x128xf32, #tpu.memory_space<vmem>>, %arg13: memref<1x128xf32, #tpu.memory_space<vmem>>, %arg14: memref<128x128xf32, #tpu.memory_space<vmem>>, %arg15: memref<1x128xf32, #tpu.memory_space<vmem>>, %arg16: memref<32x128xf32, #tpu.memory_space<vmem>>, %arg17: memref<32x128xf32, #tpu.memory_space<vmem>>) attributes {dimension_semantics = [#tpu.dimension_semantics<arbitrary>], iteration_bounds = array<i64: 1>, scalar_prefetch = 0 : i64, scratch_operands = 0 : i64, tpu.core_type = #tpu.core_type<tc>, window_params = [{pipeline_mode = #tpu.pipeline_mode<synchronous>, transform_indices = @transform_0, window_bounds = array<i64: 32, 20>}, {pipeline_mode = #tpu.pipeline_mode<synchronous>, transform_indices = @transform_1, window_bounds = array<i64: 32, 20>}, {pipeline_mode = #tpu.pipeline_mode<synchronous>, transform_indices = @transform_2, window_bounds = array<i64: 32, 20>}, {pipeline_mode = #tpu.pipeline_mode<synchronous>, transform_indices = @transform_3, window_bounds = array<i64: 20, 128>}, {pipeline_mode = #tpu.pipeline_mode<synchronous>, transform_indices = @transform_4, window_bounds = array<i64: 20, 128>}, {pipeline_mode = #tpu.pipeline_mode<synchronous>, transform_indices = @transform_5, window_bounds = array<i64: 20, 128>}, {pipeline_mode = #tpu.pipeline_mode<synchronous>, transform_indices = @transform_6, window_bounds = array<i64: 1, 128>}, {pipeline_mode = #tpu.pipeline_mode<synchronous>, transform_indices = @transform_7, window_bounds = array<i64: 128, 256>}, {pipeline_mode = #tpu.pipeline_mode<synchronous>, transform_indices = @transform_8, window_bounds = array<i64: 1, 256>}, {pipeline_mode = #tpu.pipeline_mode<synchronous>, transform_indices = @transform_9, window_bounds = array<i64: 256, 256>}, {pipeline_mode = #tpu.pipeline_mode<synchronous>, transform_indices = @transform_10, window_bounds = array<i64: 1, 256>}, {pipeline_mode = #tpu.pipeline_mode<synchronous>, transform_indices = @transform_11, window_bounds = array<i64: 256, 128>}, {pipeline_mode = #tpu.pipeline_mode<synchronous>, transform_indices = @transform_12, window_bounds = array<i64: 1, 128>}, {pipeline_mode = #tpu.pipeline_mode<synchronous>, transform_indices = @transform_13, window_bounds = array<i64: 128, 128>}, {pipeline_mode = #tpu.pipeline_mode<synchronous>, transform_indices = @transform_14, window_bounds = array<i64: 1, 128>}, {pipeline_mode = #tpu.pipeline_mode<synchronous>, transform_indices = @transform_15, window_bounds = array<i64: 32, 128>}, {pipeline_mode = #tpu.pipeline_mode<synchronous>, transform_indices = @transform_16, window_bounds = array<i64: 32, 128>}]} {
    %c0 = arith.constant 0 : index
    %c0_0 = arith.constant 0 : index
    %0 = vector.load %arg1[%c0, %c0_0] : memref<32x20xf32, #tpu.memory_space<vmem>>, vector<32x20xf32>
    %1 = vector.shape_cast %0 : vector<32x20xf32> to vector<1x32x20xf32>
    %cst = arith.constant dense<0.000000e+00> : vector<1xf32>
    %2 = vector.multi_reduction <add>, %1, %cst [1, 2] : vector<1x32x20xf32> to vector<1xf32>
    %3 = vector.shape_cast %2 : vector<1xf32> to vector<1x1x1xf32>
    %4 = vector.extract %3[0, 0, 0] : f32 from vector<1x1x1xf32>
    %5 = vector.broadcast %4 : f32 to vector<1x1xf32>
    %cst_1 = arith.constant 6.400000e+02 : f32
    %6 = vector.broadcast %cst_1 : f32 to vector<1x1xf32>
    %7 = arith.divf %5, %6 : vector<1x1xf32>
    %8 = vector.broadcast %7 : vector<1x1xf32> to vector<32x20xf32>
    %9 = arith.subf %0, %8 : vector<32x20xf32>
    %10 = arith.mulf %9, %9 : vector<32x20xf32>
    %11 = vector.shape_cast %10 : vector<32x20xf32> to vector<1x32x20xf32>
    %cst_2 = arith.constant dense<0.000000e+00> : vector<1xf32>
    %12 = vector.multi_reduction <add>, %11, %cst_2 [1, 2] : vector<1x32x20xf32> to vector<1xf32>
    %13 = vector.shape_cast %12 : vector<1xf32> to vector<1x1x1xf32>
    %14 = vector.extract %13[0, 0, 0] : f32 from vector<1x1x1xf32>
    %15 = vector.broadcast %14 : f32 to vector<1x1xf32>
    %cst_3 = arith.constant 6.400000e+02 : f32
    %16 = vector.broadcast %cst_3 : f32 to vector<1x1xf32>
    %17 = arith.divf %15, %16 : vector<1x1xf32>
    %18 = vector.broadcast %7 : vector<1x1xf32> to vector<32x20xf32>
    %19 = arith.subf %0, %18 : vector<32x20xf32>
    %cst_4 = arith.constant 9.99999974E-6 : f32
    %20 = vector.broadcast %cst_4 : f32 to vector<1x1xf32>
    %21 = arith.addf %17, %20 : vector<1x1xf32>
    %22 = math.rsqrt %21 : vector<1x1xf32>
    %23 = vector.broadcast %22 : vector<1x1xf32> to vector<32x20xf32>
    %24 = arith.mulf %19, %23 : vector<32x20xf32>
    %c0_5 = arith.constant 0 : index
    %c0_6 = arith.constant 0 : index
    %25 = vector.load %arg2[%c0_5, %c0_6] : memref<32x20xf32, #tpu.memory_space<vmem>>, vector<32x20xf32>
    %26 = vector.shape_cast %25 : vector<32x20xf32> to vector<1x32x20xf32>
    %cst_7 = arith.constant dense<0.000000e+00> : vector<1xf32>
    %27 = vector.multi_reduction <add>, %26, %cst_7 [1, 2] : vector<1x32x20xf32> to vector<1xf32>
    %28 = vector.shape_cast %27 : vector<1xf32> to vector<1x1x1xf32>
    %29 = vector.extract %28[0, 0, 0] : f32 from vector<1x1x1xf32>
    %30 = vector.broadcast %29 : f32 to vector<1x1xf32>
    %cst_8 = arith.constant 6.400000e+02 : f32
    %31 = vector.broadcast %cst_8 : f32 to vector<1x1xf32>
    %32 = arith.divf %30, %31 : vector<1x1xf32>
    %33 = vector.broadcast %32 : vector<1x1xf32> to vector<32x20xf32>
    %34 = arith.subf %25, %33 : vector<32x20xf32>
    %35 = arith.mulf %34, %34 : vector<32x20xf32>
    %36 = vector.shape_cast %35 : vector<32x20xf32> to vector<1x32x20xf32>
    %cst_9 = arith.constant dense<0.000000e+00> : vector<1xf32>
    %37 = vector.multi_reduction <add>, %36, %cst_9 [1, 2] : vector<1x32x20xf32> to vector<1xf32>
    %38 = vector.shape_cast %37 : vector<1xf32> to vector<1x1x1xf32>
    %39 = vector.extract %38[0, 0, 0] : f32 from vector<1x1x1xf32>
    %40 = vector.broadcast %39 : f32 to vector<1x1xf32>
    %cst_10 = arith.constant 6.400000e+02 : f32
    %41 = vector.broadcast %cst_10 : f32 to vector<1x1xf32>
    %42 = arith.divf %40, %41 : vector<1x1xf32>
    %43 = vector.broadcast %32 : vector<1x1xf32> to vector<32x20xf32>
    %44 = arith.subf %25, %43 : vector<32x20xf32>
    %cst_11 = arith.constant 9.99999974E-6 : f32
    %45 = vector.broadcast %cst_11 : f32 to vector<1x1xf32>
    %46 = arith.addf %42, %45 : vector<1x1xf32>
    %47 = math.rsqrt %46 : vector<1x1xf32>
    %48 = vector.broadcast %47 : vector<1x1xf32> to vector<32x20xf32>
    %49 = arith.mulf %44, %48 : vector<32x20xf32>
    %c0_12 = arith.constant 0 : index
    %c0_13 = arith.constant 0 : index
    %50 = vector.load %arg3[%c0_12, %c0_13] : memref<32x20xf32, #tpu.memory_space<vmem>>, vector<32x20xf32>
    %51 = vector.shape_cast %50 : vector<32x20xf32> to vector<1x32x20xf32>
    %cst_14 = arith.constant dense<0.000000e+00> : vector<1xf32>
    %52 = vector.multi_reduction <add>, %51, %cst_14 [1, 2] : vector<1x32x20xf32> to vector<1xf32>
    %53 = vector.shape_cast %52 : vector<1xf32> to vector<1x1x1xf32>
    %54 = vector.extract %53[0, 0, 0] : f32 from vector<1x1x1xf32>
    %55 = vector.broadcast %54 : f32 to vector<1x1xf32>
    %cst_15 = arith.constant 6.400000e+02 : f32
    %56 = vector.broadcast %cst_15 : f32 to vector<1x1xf32>
    %57 = arith.divf %55, %56 : vector<1x1xf32>
    %58 = vector.broadcast %57 : vector<1x1xf32> to vector<32x20xf32>
    %59 = arith.subf %50, %58 : vector<32x20xf32>
    %60 = arith.mulf %59, %59 : vector<32x20xf32>
    %61 = vector.shape_cast %60 : vector<32x20xf32> to vector<1x32x20xf32>
    %cst_16 = arith.constant dense<0.000000e+00> : vector<1xf32>
    %62 = vector.multi_reduction <add>, %61, %cst_16 [1, 2] : vector<1x32x20xf32> to vector<1xf32>
    %63 = vector.shape_cast %62 : vector<1xf32> to vector<1x1x1xf32>
    %64 = vector.extract %63[0, 0, 0] : f32 from vector<1x1x1xf32>
    %65 = vector.broadcast %64 : f32 to vector<1x1xf32>
    %cst_17 = arith.constant 6.400000e+02 : f32
    %66 = vector.broadcast %cst_17 : f32 to vector<1x1xf32>
    %67 = arith.divf %65, %66 : vector<1x1xf32>
    %68 = vector.broadcast %57 : vector<1x1xf32> to vector<32x20xf32>
    %69 = arith.subf %50, %68 : vector<32x20xf32>
    %cst_18 = arith.constant 9.99999974E-6 : f32
    %70 = vector.broadcast %cst_18 : f32 to vector<1x1xf32>
    %71 = arith.addf %67, %70 : vector<1x1xf32>
    %72 = math.rsqrt %71 : vector<1x1xf32>
    %73 = vector.broadcast %72 : vector<1x1xf32> to vector<32x20xf32>
    %74 = arith.mulf %69, %73 : vector<32x20xf32>
    %c0_19 = arith.constant 0 : index
    %c0_20 = arith.constant 0 : index
    %75 = vector.load %arg4[%c0_19, %c0_20] : memref<20x128xf32, #tpu.memory_space<vmem>>, vector<20x128xf32>
    %cst_21 = arith.constant dense<0.000000e+00> : vector<32x128xf32>
    %76 = tpu.matmul %24, %75, %cst_21 {dimension_numbers = #tpu.dot_dimension_numbers<[1], [0], [0], [1], [0, 0, 1, 1], [], []>} : vector<32x20xf32>, vector<20x128xf32>, vector<32x128xf32> -> vector<32x128xf32>
    %c0_22 = arith.constant 0 : index
    %c0_23 = arith.constant 0 : index
    %77 = vector.load %arg5[%c0_22, %c0_23] : memref<20x128xf32, #tpu.memory_space<vmem>>, vector<20x128xf32>
    %cst_24 = arith.constant dense<0.000000e+00> : vector<32x128xf32>
    %78 = tpu.matmul %49, %77, %cst_24 {dimension_numbers = #tpu.dot_dimension_numbers<[1], [0], [0], [1], [0, 0, 1, 1], [], []>} : vector<32x20xf32>, vector<20x128xf32>, vector<32x128xf32> -> vector<32x128xf32>
    %79 = arith.addf %76, %78 : vector<32x128xf32>
    %c0_25 = arith.constant 0 : index
    %c0_26 = arith.constant 0 : index
    %80 = vector.load %arg6[%c0_25, %c0_26] : memref<20x128xf32, #tpu.memory_space<vmem>>, vector<20x128xf32>
    %cst_27 = arith.constant dense<0.000000e+00> : vector<32x128xf32>
    %81 = tpu.matmul %74, %80, %cst_27 {dimension_numbers = #tpu.dot_dimension_numbers<[1], [0], [0], [1], [0, 0, 1, 1], [], []>} : vector<32x20xf32>, vector<20x128xf32>, vector<32x128xf32> -> vector<32x128xf32>
    %82 = arith.addf %79, %81 : vector<32x128xf32>
    %c0_28 = arith.constant 0 : index
    %c0_29 = arith.constant 0 : index
    %83 = vector.load %arg7[%c0_28, %c0_29] : memref<1x128xf32, #tpu.memory_space<vmem>>, vector<1x128xf32>
    %84 = vector.broadcast %83 : vector<1x128xf32> to vector<32x128xf32>
    %85 = arith.addf %82, %84 : vector<32x128xf32>
    %cst_30 = arith.constant 0.000000e+00 : f32
    %86 = vector.broadcast %cst_30 : f32 to vector<32x128xf32>
    %87 = arith.maximumf %85, %86 : vector<32x128xf32>
    %c0_31 = arith.constant 0 : index
    %c0_32 = arith.constant 0 : index
    %88 = vector.load %arg8[%c0_31, %c0_32] : memref<128x256xf32, #tpu.memory_space<vmem>>, vector<128x256xf32>
    %cst_33 = arith.constant dense<0.000000e+00> : vector<32x256xf32>
    %89 = tpu.matmul %87, %88, %cst_33 {dimension_numbers = #tpu.dot_dimension_numbers<[1], [0], [0], [1], [0, 0, 1, 1], [], []>} : vector<32x128xf32>, vector<128x256xf32>, vector<32x256xf32> -> vector<32x256xf32>
    %c0_34 = arith.constant 0 : index
    %c0_35 = arith.constant 0 : index
    %90 = vector.load %arg9[%c0_34, %c0_35] : memref<1x256xf32, #tpu.memory_space<vmem>>, vector<1x256xf32>
    %91 = vector.broadcast %90 : vector<1x256xf32> to vector<32x256xf32>
    %92 = arith.addf %89, %91 : vector<32x256xf32>
    %cst_36 = arith.constant 0.000000e+00 : f32
    %93 = vector.broadcast %cst_36 : f32 to vector<32x256xf32>
    %94 = arith.maximumf %92, %93 : vector<32x256xf32>
    %c0_37 = arith.constant 0 : index
    %c0_38 = arith.constant 0 : index
    %95 = vector.load %arg10[%c0_37, %c0_38] : memref<256x256xf32, #tpu.memory_space<vmem>>, vector<256x256xf32>
    %cst_39 = arith.constant dense<0.000000e+00> : vector<32x256xf32>
    %96 = tpu.matmul %94, %95, %cst_39 {dimension_numbers = #tpu.dot_dimension_numbers<[1], [0], [0], [1], [0, 0, 1, 1], [], []>} : vector<32x256xf32>, vector<256x256xf32>, vector<32x256xf32> -> vector<32x256xf32>
    %c0_40 = arith.constant 0 : index
    %c0_41 = arith.constant 0 : index
    %97 = vector.load %arg11[%c0_40, %c0_41] : memref<1x256xf32, #tpu.memory_space<vmem>>, vector<1x256xf32>
    %98 = vector.broadcast %97 : vector<1x256xf32> to vector<32x256xf32>
    %99 = arith.addf %96, %98 : vector<32x256xf32>
    %cst_42 = arith.constant 0.000000e+00 : f32
    %100 = vector.broadcast %cst_42 : f32 to vector<32x256xf32>
    %101 = arith.maximumf %99, %100 : vector<32x256xf32>
    %c0_43 = arith.constant 0 : index
    %c0_44 = arith.constant 0 : index
    %102 = vector.load %arg12[%c0_43, %c0_44] : memref<256x128xf32, #tpu.memory_space<vmem>>, vector<256x128xf32>
    %cst_45 = arith.constant dense<0.000000e+00> : vector<32x128xf32>
    %103 = tpu.matmul %101, %102, %cst_45 {dimension_numbers = #tpu.dot_dimension_numbers<[1], [0], [0], [1], [0, 0, 1, 1], [], []>} : vector<32x256xf32>, vector<256x128xf32>, vector<32x128xf32> -> vector<32x128xf32>
    %c0_46 = arith.constant 0 : index
    %c0_47 = arith.constant 0 : index
    %104 = vector.load %arg13[%c0_46, %c0_47] : memref<1x128xf32, #tpu.memory_space<vmem>>, vector<1x128xf32>
    %105 = vector.broadcast %104 : vector<1x128xf32> to vector<32x128xf32>
    %106 = arith.addf %103, %105 : vector<32x128xf32>
    %cst_48 = arith.constant 0.000000e+00 : f32
    %107 = vector.broadcast %cst_48 : f32 to vector<32x128xf32>
    %108 = arith.maximumf %106, %107 : vector<32x128xf32>
    %c0_49 = arith.constant 0 : index
    %c0_50 = arith.constant 0 : index
    %109 = vector.load %arg16[%c0_49, %c0_50] : memref<32x128xf32, #tpu.memory_space<vmem>>, vector<32x128xf32>
    tpu.vector_store %arg16[%c0_49, %c0_50], %108 {strides = array<i32>} : memref<32x128xf32, #tpu.memory_space<vmem>>, vector<32x128xf32>,
    %c0_51 = arith.constant 0 : index
    %c0_52 = arith.constant 0 : index
    %110 = vector.load %arg14[%c0_51, %c0_52] : memref<128x128xf32, #tpu.memory_space<vmem>>, vector<128x128xf32>
    %cst_53 = arith.constant dense<0.000000e+00> : vector<32x128xf32>
    %111 = tpu.matmul %108, %110, %cst_53 {dimension_numbers = #tpu.dot_dimension_numbers<[1], [0], [0], [1], [0, 0, 1, 1], [], []>} : vector<32x128xf32>, vector<128x128xf32>, vector<32x128xf32> -> vector<32x128xf32>
    %c0_54 = arith.constant 0 : index
    %c0_55 = arith.constant 0 : index
    %112 = vector.load %arg15[%c0_54, %c0_55] : memref<1x128xf32, #tpu.memory_space<vmem>>, vector<1x128xf32>
    %113 = vector.broadcast %112 : vector<1x128xf32> to vector<32x128xf32>
    %114 = arith.addf %111, %113 : vector<32x128xf32>
    %c0_56 = arith.constant 0 : index
    %c0_57 = arith.constant 0 : index
    %115 = vector.load %arg17[%c0_56, %c0_57] : memref<32x128xf32, #tpu.memory_space<vmem>>, vector<32x128xf32>
    tpu.vector_store %arg17[%c0_56, %c0_57], %114 {strides = array<i32>} : memref<32x128xf32, #tpu.memory_space<vmem>>, vector<32x128xf32>,
    return
  }
  func.func @transform_0(%arg0: i32) -> (i32, i32) {
    %c0_i32 = arith.constant 0 : i32
    %c0_i32_0 = arith.constant 0 : i32
    %c0_i32_1 = arith.constant 0 : i32
    return %c0_i32, %c0_i32_0 : i32, i32
  }
  func.func @transform_1(%arg0: i32) -> (i32, i32) {
    %c0_i32 = arith.constant 0 : i32
    %c0_i32_0 = arith.constant 0 : i32
    %c0_i32_1 = arith.constant 0 : i32
    return %c0_i32, %c0_i32_0 : i32, i32
  }
  func.func @transform_2(%arg0: i32) -> (i32, i32) {
    %c0_i32 = arith.constant 0 : i32
    %c0_i32_0 = arith.constant 0 : i32
    %c0_i32_1 = arith.constant 0 : i32
    return %c0_i32, %c0_i32_0 : i32, i32
  }
  func.func @transform_3(%arg0: i32) -> (i32, i32) {
    %c0_i32 = arith.constant 0 : i32
    %c0_i32_0 = arith.constant 0 : i32
    %c0_i32_1 = arith.constant 0 : i32
    return %c0_i32, %c0_i32_0 : i32, i32
  }
  func.func @transform_4(%arg0: i32) -> (i32, i32) {
    %c0_i32 = arith.constant 0 : i32
    %c0_i32_0 = arith.constant 0 : i32
    %c0_i32_1 = arith.constant 0 : i32
    return %c0_i32, %c0_i32_0 : i32, i32
  }
  func.func @transform_5(%arg0: i32) -> (i32, i32) {
    %c0_i32 = arith.constant 0 : i32
    %c0_i32_0 = arith.constant 0 : i32
    %c0_i32_1 = arith.constant 0 : i32
    return %c0_i32, %c0_i32_0 : i32, i32
  }
  func.func @transform_6(%arg0: i32) -> (i32, i32) {
    %c0_i32 = arith.constant 0 : i32
    %c0_i32_0 = arith.constant 0 : i32
    %c0_i32_1 = arith.constant 0 : i32
    return %c0_i32, %c0_i32_0 : i32, i32
  }
  func.func @transform_7(%arg0: i32) -> (i32, i32) {
    %c0_i32 = arith.constant 0 : i32
    %c0_i32_0 = arith.constant 0 : i32
    %c0_i32_1 = arith.constant 0 : i32
    return %c0_i32, %c0_i32_0 : i32, i32
  }
  func.func @transform_8(%arg0: i32) -> (i32, i32) {
    %c0_i32 = arith.constant 0 : i32
    %c0_i32_0 = arith.constant 0 : i32
    %c0_i32_1 = arith.constant 0 : i32
    return %c0_i32, %c0_i32_0 : i32, i32
  }
  func.func @transform_9(%arg0: i32) -> (i32, i32) {
    %c0_i32 = arith.constant 0 : i32
    %c0_i32_0 = arith.constant 0 : i32
    %c0_i32_1 = arith.constant 0 : i32
    return %c0_i32, %c0_i32_0 : i32, i32
  }
  func.func @transform_10(%arg0: i32) -> (i32, i32) {
    %c0_i32 = arith.constant 0 : i32
    %c0_i32_0 = arith.constant 0 : i32
    %c0_i32_1 = arith.constant 0 : i32
    return %c0_i32, %c0_i32_0 : i32, i32
  }
  func.func @transform_11(%arg0: i32) -> (i32, i32) {
    %c0_i32 = arith.constant 0 : i32
    %c0_i32_0 = arith.constant 0 : i32
    %c0_i32_1 = arith.constant 0 : i32
    return %c0_i32, %c0_i32_0 : i32, i32
  }
  func.func @transform_12(%arg0: i32) -> (i32, i32) {
    %c0_i32 = arith.constant 0 : i32
    %c0_i32_0 = arith.constant 0 : i32
    %c0_i32_1 = arith.constant 0 : i32
    return %c0_i32, %c0_i32_0 : i32, i32
  }
  func.func @transform_13(%arg0: i32) -> (i32, i32) {
    %c0_i32 = arith.constant 0 : i32
    %c0_i32_0 = arith.constant 0 : i32
    %c0_i32_1 = arith.constant 0 : i32
    return %c0_i32, %c0_i32_0 : i32, i32
  }
  func.func @transform_14(%arg0: i32) -> (i32, i32) {
    %c0_i32 = arith.constant 0 : i32
    %c0_i32_0 = arith.constant 0 : i32
    %c0_i32_1 = arith.constant 0 : i32
    return %c0_i32, %c0_i32_0 : i32, i32
  }
  func.func @transform_15(%arg0: i32) -> (i32, i32) {
    %c0_i32 = arith.constant 0 : i32
    %c0_i32_0 = arith.constant 0 : i32
    %c0_i32_1 = arith.constant 0 : i32
    return %c0_i32, %c0_i32_0 : i32, i32
  }
  func.func @transform_16(%arg0: i32) -> (i32, i32) {
    %c0_i32 = arith.constant 0 : i32
    %c0_i32_0 = arith.constant 0 : i32
    %c0_i32_1 = arith.constant 0 : i32
    return %c0_i32, %c0_i32_0 : i32, i32
  }
}

</mosaic_0001>

<bundles_post_ra>
// kernel: hspgcn_l_forward.1
= control target key start
LH: loop header
LB: loop body
LE: loop exit
PB: predicated region body
PF: predicated region fallthrough
CT: control target
= control target key end

     0   :  { %s2153_s0 = inlined_call_operand.vmem [shape: f32[32,20], index: 0, kind: input, shape index: {}]   ;;  %s2154_s1 = inlined_call_operand.hbm [shape: f32[32,20], index: 1, kind: input, shape index: {}]   ;;  %s2155_s2 = inlined_call_operand.hbm [shape: f32[32,20], index: 2, kind: input, shape index: {}]   ;;  %s2156_s3 = inlined_call_operand.hbm [shape: f32[20,128], index: 3, kind: input, shape index: {}]   ;;  %s2157_s4 = inlined_call_operand.hbm [shape: f32[20,128], index: 4, kind: input, shape index: {}]   ;;  %s2158_s5 = inlined_call_operand.hbm [shape: f32[20,128], index: 5, kind: input, shape index: {}]   ;;  %s2159_s6 = inlined_call_operand.hbm [shape: f32[1,128], index: 6, kind: input, shape index: {}]   ;;  %s2160_s7 = inlined_call_operand.hbm [shape: f32[128,256], index: 7, kind: input, shape index: {}]   ;;  %s2161_s8 = inlined_call_operand.vmem [shape: f32[1,256], index: 8, kind: input, shape index: {}]   ;;  %s2162_s9 = inlined_call_operand.hbm [shape: f32[256,256], index: 9, kind: input, shape index: {}]   ;;  %s2163_s10 = inlined_call_operand.hbm [shape: f32[1,256], index: 10, kind: input, shape index: {}]   ;;  %s2164_s11 = inlined_call_operand.hbm [shape: f32[256,128], index: 11, kind: input, shape index: {}]   ;;  %s2165_s12 = inlined_call_operand.hbm [shape: f32[1,128], index: 12, kind: input, shape index: {}]   ;;  %s2166_s13 = inlined_call_operand.hbm [shape: f32[128,128], index: 13, kind: input, shape index: {}]   ;;  %s2167_s14 = inlined_call_operand.hbm [shape: f32[1,128], index: 14, kind: input, shape index: {}]   ;;  %s2168_s15 = inlined_call_operand.hbm [shape: f32[32,128], index: 15, kind: output, shape index: {0}]   ;;  %s2169_s16 = inlined_call_operand.vmem [shape: f32[32,128], index: 16, kind: output, shape index: {1}]  }
   0x1   :  { %2171 = sst [smem:[#allocation32_spill]] %s2153_s0 }
   0x2   :  { %22 = vsyncpa [#allocation3], 0 }
   0x3   :  { %23 = vsyncpa [#allocation6], 0 }
   0x4   :  { %24 = vsyncpa [#allocation9], 0 }
   0x5   :  { %25 = vsyncpa [#allocation12], 0 }
   0x6   :  { %26 = vsyncpa [#allocation15], 0 }
   0x7   :  { %27 = vsyncpa [#allocation18], 0 }
   0x8   :  { %28 = vsyncpa [#allocation21], 0 }
   0x9   :  { %29 = vsyncpa [#allocation4], 0  ;;  %s1809_s21 = smov [#allocation5]   ;;  %s1810_s23 = smov [#allocation8]  }
   0xa   :  { %s49_s22 = sshll.u32 %s1809_s21, 4  ;;  %s73_s24 = sshll.u32 %s1810_s23, 4  ;;  %s50_s22 = int_to_ptr.vmem [resolvable:$true] %s49_s22  ;;  %s74_s24 = int_to_ptr.vmem [resolvable:$true] %s73_s24 }
   0xb   :  { %s1521_s25 = scalar_lea.vmem %s50_s22, 512  ;;  %p1526_p1 = scmp.lt.s32.totalorder %s50_s22, %s50_s22 }
   0xc   :  { %p1522_p0 = scmp.ne.s32.totalorder %s50_s22, %s1521_s25  ;;  %p1527_p2 = scmp.lt.s32.totalorder %s1521_s25, %s1521_s25 }
   0xe   :  { %p1528_p3 = por %p1527_p2, %p1526_p1 }
  0x10   :  { %p1529_p4 = pnand %p1528_p3, %p1522_p0 }
  0x12   :  { %1532 = shalt.err (!%p1529_p4)
}
  0x13   :  { %s1811_s26 = smov 128   ;;  %s1812_s27 = smov 8  }
  0x14   :  { %55 = dma.hbm_to_vmem [thread:$0]  %s2155_s2, 512, %s50_s22, [#allocation6], %s1811_s26, %s1811_s26, %s1812_s27  }
  0x15   :  { %s1541_s30 = scalar_lea.vmem %s74_s24, 384  ;;  %p1546_p6 = scmp.lt.s32.totalorder %s74_s24, %s74_s24 }
  0x16   :  { %p1542_p5 = scmp.ne.s32.totalorder %s74_s24, %s1541_s30  ;;  %p1547_p7 = scmp.lt.s32.totalorder %s1541_s30, %s1541_s30 }
  0x18   :  { %p1548_p8 = por %p1547_p7, %p1546_p6 }
  0x1a   :  { %p1549_p9 = pnand %p1548_p8, %p1542_p5 }
  0x1c   :  { %1552 = shalt.err (!%p1549_p9)
}
  0x1d   :  { %79 = dma.hbm_to_vmem [thread:$0]  %s2157_s4, 384, %s74_s24, [#allocation9], %s1811_s26, %s1811_s26, %s1812_s27  }
  0x1e   :  { %s1813_s18 = smov [#allocation11]  }
  0x1f   :  { %s98_s19 = sshll.u32 %s1813_s18, 4  ;;  %s99_s19 = int_to_ptr.vmem [resolvable:$true] %s98_s19 }
  0x20   :  { %s1561_s20 = scalar_lea.vmem %s99_s19, 16  ;;  %s1565_s2 = scalar_lea.vmem %s99_s19, 32 }
  0x21   :  { %p1562_p10 = scmp.ne.s32.totalorder %s99_s19, %s1561_s20  ;;  %p1566_p11 = scmp.lt.s32.totalorder %s99_s19, %s99_s19 }
  0x22   :  { %p1567_p12 = scmp.lt.s32.totalorder %s1565_s2, %s1561_s20 }
  0x24   :  { %p1568_p13 = por %p1567_p12, %p1566_p11 }
  0x26   :  { %p1569_p0 = pnand %p1568_p13, %p1562_p10 }
  0x28   :  { %1572 = shalt.err (!%p1569_p0)
}
  0x29   :  { %101 = dma.hbm_to_vmem [thread:$0]  %s2159_s6, 16, %s99_s19, [#allocation12]  }
  0x2a   :  { %s1814_s23 = smov [#allocation14]   ;;  %s1815_s28 = smov [#allocation17]  }
  0x2b   :  { %s121_s25 = sshll.u32 %s1814_s23, 4  ;;  %s143_s4 = sshll.u32 %s1815_s28, 4  ;;  %s122_s25 = int_to_ptr.vmem [resolvable:$true] %s121_s25  ;;  %s144_s4 = int_to_ptr.vmem [resolvable:$true] %s143_s4 }
  0x2c   :  { %s1581_s24 = scalar_lea.vmem %s122_s25, 8192  ;;  %p1586_p2 = scmp.lt.s32.totalorder %s122_s25, %s122_s25 }
  0x2d   :  { %p1582_p1 = scmp.ne.s32.totalorder %s122_s25, %s1581_s24  ;;  %p1587_p3 = scmp.lt.s32.totalorder %s1581_s24, %s1581_s24 }
  0x2f   :  { %p1588_p4 = por %p1587_p3, %p1586_p2 }
  0x31   :  { %p1589_p5 = pnand %p1588_p4, %p1582_p1 }
  0x33   :  { %1592 = shalt.err (!%p1589_p5)
}
  0x34   :  { %s1816_s29 = smov 256   ;;  %s1817_s30 = smov 16  }
  0x35   :  { %127 = dma.hbm_to_vmem [thread:$0]  %s2162_s9, 8192, %s122_s25, [#allocation15], %s1816_s29, %s1816_s29, %s1817_s30  }
  0x36   :  { %s1601_s6 = scalar_lea.vmem %s144_s4, 4096  ;;  %p1606_p7 = scmp.lt.s32.totalorder %s144_s4, %s144_s4 }
  0x37   :  { %p1602_p6 = scmp.ne.s32.totalorder %s144_s4, %s1601_s6  ;;  %p1607_p8 = scmp.lt.s32.totalorder %s1601_s6, %s1601_s6 }
  0x39   :  { %p1608_p9 = por %p1607_p8, %p1606_p7 }
  0x3b   :  { %p1609_p10 = pnand %p1608_p9, %p1602_p6 }
  0x3d   :  { %1612 = shalt.err (!%p1609_p10)
}
  0x3e   :  { %149 = dma.hbm_to_vmem [thread:$0]  %s2164_s11, 4096, %s144_s4, [#allocation18], %s1811_s26, %s1811_s26, %s1812_s27  }
  0x3f   :  { %s1818_s20 = smov [#allocation20]   ;;  %s1819_s21 = smov [#allocation2]  }
  0x40   :  { %s165_s2 = sshll.u32 %s1818_s20, 4  ;;  %s37_s9 = sshll.u32 %s1819_s21, 4  ;;  %s166_s2 = int_to_ptr.vmem [resolvable:$true] %s165_s2  ;;  %s38_s9 = int_to_ptr.vmem [resolvable:$true] %s37_s9 }
  0x41   :  { %s1621_s22 = scalar_lea.vmem %s166_s2, 2048  ;;  %p1626_p12 = scmp.lt.s32.totalorder %s166_s2, %s166_s2 }
  0x42   :  { %p1622_p11 = scmp.ne.s32.totalorder %s166_s2, %s1621_s22  ;;  %p1627_p13 = scmp.lt.s32.totalorder %s1621_s22, %s1621_s22 }
  0x44   :  { %p1628_p0 = por %p1627_p13, %p1626_p12 }
  0x46   :  { %p1629_p1 = pnand %p1628_p0, %p1622_p11 }
  0x48   :  { %1632 = shalt.err (!%p1629_p1)
}
  0x49   :  { %171 = dma.hbm_to_vmem [thread:$0]  %s2166_s13, 2048, %s166_s2, [#allocation21], %s1811_s26, %s1811_s26, %s1812_s27  }
  0x4a   :  { %s1641_s11 = scalar_lea.vmem %s38_s9, 512  ;;  %p1646_p3 = scmp.lt.s32.totalorder %s38_s9, %s38_s9 }
  0x4b   :  { %p1642_p2 = scmp.ne.s32.totalorder %s38_s9, %s1641_s11  ;;  %p1647_p4 = scmp.lt.s32.totalorder %s1641_s11, %s1641_s11 }
  0x4d   :  { %p1648_p5 = por %p1647_p4, %p1646_p3 }
  0x4f   :  { %p1649_p6 = pnand %p1648_p5, %p1642_p2 }
  0x51   :  { %1652 = shalt.err (!%p1649_p6)
}
  0x52   :  { %43 = dma.hbm_to_vmem [thread:$0]  %s2154_s1, 512, %s38_s9, [#allocation3], %s1811_s26, %s1811_s26, %s1812_s27  }
  0x53   :  { %s1820_s24 = smov [#allocation7]   ;;  %s1821_s17 = smov [#allocation10]  }
  0x54   :  { %s61_s0 = sshll.u32 %s1820_s24, 4  ;;  %s85_s13 = sshll.u32 %s1821_s17, 4  ;;  %s62_s0 = int_to_ptr.vmem [resolvable:$true] %s61_s0  ;;  %s86_s13 = int_to_ptr.vmem [resolvable:$true] %s85_s13 }
  0x55   :  { %s1661_s6 = scalar_lea.vmem %s62_s0, 384  ;;  %p1666_p8 = scmp.lt.s32.totalorder %s62_s0, %s62_s0 }
  0x56   :  { %p1662_p7 = scmp.ne.s32.totalorder %s62_s0, %s1661_s6  ;;  %p1667_p9 = scmp.lt.s32.totalorder %s1661_s6, %s1661_s6 }
  0x58   :  { %p1668_p10 = por %p1667_p9, %p1666_p8 }
  0x5a   :  { %p1669_p11 = pnand %p1668_p10, %p1662_p7 }
  0x5c   :  { %1672 = shalt.err (!%p1669_p11)
}
  0x5d   :  { %67 = dma.hbm_to_vmem [thread:$0]  %s2156_s3, 384, %s62_s0, [#allocation6], %s1811_s26, %s1811_s26, %s1812_s27  }
  0x5e   :  { %s1681_s1 = scalar_lea.vmem %s86_s13, 384  ;;  %p1686_p13 = scmp.lt.s32.totalorder %s86_s13, %s86_s13 }
  0x5f   :  { %p1682_p12 = scmp.ne.s32.totalorder %s86_s13, %s1681_s1  ;;  %p1687_p0 = scmp.lt.s32.totalorder %s1681_s1, %s1681_s1 }
  0x61   :  { %p1688_p1 = por %p1687_p0, %p1686_p13 }
  0x63   :  { %p1689_p2 = pnand %p1688_p1, %p1682_p12 }
  0x65   :  { %1692 = shalt.err (!%p1689_p2)
}
  0x66   :  { %91 = dma.hbm_to_vmem [thread:$0]  %s2158_s5, 384, %s86_s13, [#allocation9], %s1811_s26, %s1811_s26, %s1812_s27  }
  0x67   :  { %s1822_s21 = smov [#allocation13]   ;;  %s1823_s22 = smov [#allocation16]  }
  0x68   :  { %s107_s9 = sshll.u32 %s1822_s21, 4  ;;  %s134_s3 = sshll.u32 %s1823_s22, 4  ;;  %s108_s9 = int_to_ptr.vmem [resolvable:$true] %s107_s9  ;;  %s135_s3 = int_to_ptr.vmem [resolvable:$true] %s134_s3 }
  0x69   :  { %s1701_s23 = scalar_lea.vmem %s108_s9, 4096  ;;  %p1706_p4 = scmp.lt.s32.totalorder %s108_s9, %s108_s9 }
  0x6a   :  { %p1702_p3 = scmp.ne.s32.totalorder %s108_s9, %s1701_s23  ;;  %p1707_p5 = scmp.lt.s32.totalorder %s1701_s23, %s1701_s23 }
  0x6c   :  { %p1708_p6 = por %p1707_p5, %p1706_p4 }
  0x6e   :  { %p1709_p7 = pnand %p1708_p6, %p1702_p3 }
  0x70   :  { %1712 = shalt.err (!%p1709_p7)
}
  0x71   :  { %113 = dma.hbm_to_vmem [thread:$0]  %s2160_s7, 4096, %s108_s9, [#allocation12], %s1816_s29, %s1816_s29, %s1817_s30  }
  0x72   :  { %s1721_s5 = scalar_lea.vmem %s135_s3, 32  ;;  %p1726_p9 = scmp.lt.s32.totalorder %s135_s3, %s135_s3 }
  0x73   :  { %p1722_p8 = scmp.ne.s32.totalorder %s135_s3, %s1721_s5  ;;  %p1727_p10 = scmp.lt.s32.totalorder %s1721_s5, %s1721_s5 }
  0x75   :  { %p1728_p11 = por %p1727_p10, %p1726_p9 }
  0x77   :  { %p1729_p12 = pnand %p1728_p11, %p1722_p8 }
  0x79   :  { %1732 = shalt.err (!%p1729_p12)
}
  0x7a   :  { %137 = dma.hbm_to_vmem [thread:$0]  %s2163_s10, 32, %s135_s3, [#allocation15]  }
  0x7b   :  { %s1824_s24 = smov [#allocation19]   ;;  %s1825_s17 = smov [#allocation22]  }
  0x7c   :  { %s156_s0 = sshll.u32 %s1824_s24, 4  ;;  %s178_s13 = sshll.u32 %s1825_s17, 4  ;;  %s157_s0 = int_to_ptr.vmem [resolvable:$true] %s156_s0  ;;  %s179_s13 = int_to_ptr.vmem [resolvable:$true] %s178_s13 }
  0x7d   :  { %s1741_s6 = scalar_lea.vmem %s157_s0, 16  ;;  %s1745_s7 = scalar_lea.vmem %s157_s0, 32 }
  0x7e   :  { %p1742_p13 = scmp.ne.s32.totalorder %s157_s0, %s1741_s6  ;;  %p1746_p0 = scmp.lt.s32.totalorder %s157_s0, %s157_s0 }
  0x7f   :  { %p1747_p1 = scmp.lt.s32.totalorder %s1745_s7, %s1741_s6 }
  0x81   :  { %p1748_p2 = por %p1747_p1, %p1746_p0 }
  0x83   :  { %p1749_p3 = pnand %p1748_p2, %p1742_p13 }
  0x85   :  { %1752 = shalt.err (!%p1749_p3)
}
  0x86   :  { %159 = dma.hbm_to_vmem [thread:$0]  %s2165_s12, 16, %s157_s0, [#allocation18]  }
  0x87   :  { %s1761_s18 = scalar_lea.vmem %s179_s13, 16  ;;  %s1765_s10 = scalar_lea.vmem %s179_s13, 32 }
  0x88   :  { %p1762_p4 = scmp.ne.s32.totalorder %s179_s13, %s1761_s18  ;;  %p1766_p5 = scmp.lt.s32.totalorder %s179_s13, %s179_s13 }
  0x89   :  { %p1767_p6 = scmp.lt.s32.totalorder %s1765_s10, %s1761_s18 }
  0x8b   :  { %p1768_p7 = por %p1767_p6, %p1766_p5 }
  0x8d   :  { %p1769_p8 = pnand %p1768_p7, %p1762_p4 }
  0x8f   :  { %1772 = shalt.err (!%p1769_p8)
}
  0x90   :  { %181 = dma.hbm_to_vmem [thread:$0]  %s2167_s14, 16, %s179_s13, [#allocation21]  }
  0x91   :  { %1793 = dma.done.wait [#allocation3], 512  }
  0x92   :  { %1794 = vsyncadd [#allocation3], 4294966784 }
  0x93   :  { %1795 = dma.done.wait [#allocation6], 896  }
  0x94   :  { %1796 = vsyncadd [#allocation6], 4294966400 }
  0x95   :  { %1797 = dma.done.wait [#allocation9], 768  }
  0x96   :  { %1798 = vsyncadd [#allocation9], 4294966528 }
  0x97   :  { %1799 = dma.done.wait [#allocation12], 4112  }
  0x98   :  { %1800 = vsyncadd [#allocation12], 4294963184 }
  0x99   :  { %1801 = dma.done.wait [#allocation15], 8224  }
  0x9a   :  { %1802 = vsyncadd [#allocation15], 4294959072 }
  0x9b   :  { %1803 = dma.done.wait [#allocation18], 4112  }
  0x9c   :  { %1804 = vsyncadd [#allocation18], 4294963184 }
  0x9d   :  { %1805 = dma.done.wait [#allocation21], 2064  }
  0x9e   :  { %1806 = vsyncadd [#allocation21], 4294965232  ;;  %vm225_vm0 = vcmask 162816   ;;  %s2172_s2 = sld [smem:[#allocation32_spill]]  ;;  %v1995_v11 = vld [vmem:[#allocation2] sm:$0xff]  ;;  %v1997_v12 = vld [vmem:[#allocation2 + $0x8] sm:$0xff] }
  0x9f   :  { %v281_v13 = vsel %vm225_vm0, %v1995_v11, 0.0  ;;  %v282_v14 = vsel %vm225_vm0, %v1997_v12, 0.0  ;;  %v2003_v15 = vld [vmem:[#allocation2 + $0x10] sm:$0xff]  ;;  %v2005_v17 = vld [vmem:[#allocation2 + $0x18] sm:$0xff]  ;;  %v2031_v46 = vld [vmem:[#allocation5] sm:$0xff]  ;;  %vm403_vm1 = vcmask 1043456  }
  0xa0   :  { %v283_v16 = vadd.f32 %v282_v14, %v281_v13  ;;  %v284_v18 = vsel %vm225_vm0, %v2003_v15, 0.0  ;;  %v286_v20 = vsel %vm225_vm0, %v2005_v17, 0.0  ;;  %v2033_v47 = vld [vmem:[#allocation5 + $0x8] sm:$0xff]  ;;  %v335_v48 = vsel %vm225_vm0, %v2031_v46, 0.0  ;;  %v2039_v50 = vld [vmem:[#allocation5 + $0x10] sm:$0xff]  ;;  %v2043_v53 = vld [vmem:[#allocation5 + $0x18] sm:$0xff] }
  0xa1   :  { %v336_v49 = vsel %vm225_vm0, %v2033_v47, 0.0  ;;  %v338_v52 = vsel %vm225_vm0, %v2039_v50, 0.0  ;;  %v340_v55 = vsel %vm225_vm0, %v2043_v53, 0.0 }
  0xa2   :  { %v285_v19 = vadd.f32 %v284_v18, %v283_v16  ;;  %v337_v51 = vadd.f32 %v336_v49, %v335_v48 }
  0xa4   :  { %v221_v0 = vld [vmem:[%s2172_s2] sm:$0xff]  ;;  %v222_v1 = vld [vmem:[%s2172_s2 + $0x8] sm:$0xff]  ;;  %v223_v2 = vld [vmem:[%s2172_s2 + $0x10] sm:$0xff]  ;;  %v287_v21 = vadd.f32 %v286_v20, %v285_v19  ;;  %v339_v54 = vadd.f32 %v338_v52, %v337_v51 }
  0xa5   :  { %v224_v3 = vld [vmem:[%s2172_s2 + $0x18] sm:$0xff]  ;;  %v226_v4 = vsel %vm225_vm0, %v221_v0, 0.0  ;;  %v227_v5 = vsel %vm225_vm0, %v222_v1, 0.0  ;;  %v229_v6 = vsel %vm225_vm0, %v223_v2, 0.0 }
  0xa6   :  { %v228_v7 = vadd.f32 %v227_v5, %v226_v4  ;;  %v231_v8 = vsel %vm225_vm0, %v224_v3, 0.0  ;;  %288 = vadd.xlane.f32.xlu1 %v287_v21  ;;  %v341_v56 = vadd.f32 %v340_v55, %v339_v54 }
  0xa8   :  { %v230_v9 = vadd.f32 %v229_v6, %v228_v7 }
  0xaa   :  { %v232_v10 = vadd.f32 %v231_v8, %v230_v9 }
  0xac   :  { %233 = vadd.xlane.f32.xlu0 %v232_v10 }
 0x12f   :  { %v289_v57 = vpop.xlane.xlu1 %288 }
 0x130   :  { %v290_v58 = vrot.slane %v289_v57, 4 }
 0x132   :  { %v291_v59 = vadd.f32 %v290_v58, %v289_v57 }
 0x134   :  { %v292_v60 = vrot.slane %v291_v59, 2 }
 0x135   :  { %v234_v22 = vpop.xlane.xlu0 %233 }
 0x136   :  { %v235_v23 = vrot.slane %v234_v22, 4 }
 0x138   :  { %v236_v24 = vadd.f32 %v235_v23, %v234_v22 }
 0x13a   :  { %v237_v25 = vrot.slane %v236_v24, 2 }
 0x13c   :  { %v238_v26 = vadd.f32 %v237_v25, %v236_v24  ;;  %v390_v24 = vld [vmem:[#allocation8 + $0x10] sm:$0xf]  ;;  %v389_v25 = vld [vmem:[#allocation8 + $0x8] sm:$0xff] }
 0x13d   :  { %1402 = vmatprep.subr.msk.mxu0 %vm403_vm1, %v390_v24 }
 0x13e   :  { %v239_v27 = vrot.slane %v238_v26, 1  ;;  %1403 = vmatpush3.msk.msra.mxu0 %vm403_vm1, %v390_v24  ;;  %v737_v24 = vld [vmem:[#allocation13 + $0xb8] sm:$0xff] }
 0x13f   :  { %1404 = vmatprep.subr.mxu0 %v389_v25 }
 0x140   :  { %v240_v28 = vadd.f32 %v239_v27, %v238_v26  ;;  %v388_v26 = vld [vmem:[#allocation8] sm:$0xff]  ;;  %1405 = vmatpush3.msra.mxu0 %v389_v25  ;;  %v387_v27 = vld [vmem:[#allocation7 + $0x10] sm:$0xf] }
 0x141   :  { %1406 = vmatprep.subr.mxu0 %v388_v26  ;;  %v736_v25 = vld [vmem:[#allocation13 + $0xb0] sm:$0xff] }
 0x142   :  { %1476 = vpush %v240_v28  ;;  %1407 = vmatpush3.msra.mxu0 %v388_v26  ;;  %v735_v26 = vld [vmem:[#allocation13 + $0xa8] sm:$0xff] }
 0x143   :  { %1414 = vmatprep.subr.msk.mxu0 %vm403_vm1, %v387_v27 }
 0x173   :  { %s1477_s25 = spop %1476 }
 0x174   :  { %v242_v29 = vstv %s1477_s25 }
 0x175   :  { %v244_v30 = vmul.f32 0.0015625, %v242_v29 }
 0x177   :  { %v2011_v31 = vsub.f32 %v221_v0, %v244_v30  ;;  %v2013_v32 = vsub.f32 %v222_v1, %v244_v30  ;;  %v2015_v33 = vsub.f32 %v223_v2, %v244_v30  ;;  %v2017_v34 = vsub.f32 %v224_v3, %v244_v30 }
 0x178   :  { %v293_v0 = vadd.f32 %v292_v60, %v291_v59 }
 0x179   :  { %v249_v35 = vmul.f32 %v2011_v31, %v2011_v31  ;;  %v250_v36 = vmul.f32 %v2013_v32, %v2013_v32  ;;  %v251_v37 = vmul.f32 %v2015_v33, %v2015_v33  ;;  %v252_v38 = vmul.f32 %v2017_v34, %v2017_v34 }
 0x17a   :  { %v294_v3 = vrot.slane %v293_v0, 1 }
 0x17b   :  { %v253_v39 = vsel %vm225_vm0, %v249_v35, 0.0  ;;  %v254_v40 = vsel %vm225_vm0, %v250_v36, 0.0  ;;  %v256_v42 = vsel %vm225_vm0, %v251_v37, 0.0  ;;  %v258_v44 = vsel %vm225_vm0, %v252_v38, 0.0 }
 0x17c   :  { %v255_v41 = vadd.f32 %v254_v40, %v253_v39  ;;  %v295_v6 = vadd.f32 %v294_v3, %v293_v0 }
 0x17e   :  { %v257_v43 = vadd.f32 %v256_v42, %v255_v41 }
 0x180   :  { %v259_v45 = vadd.f32 %v258_v44, %v257_v43 }
 0x182   :  { %260 = vadd.xlane.f32.xlu0 %v259_v45 }
 0x186   :  { %342 = vadd.xlane.f32.xlu0 %v341_v56 }
 0x20b   :  { %v261_v61 = vpop.xlane.xlu0 %260 }
 0x20c   :  { %v262_v62 = vrot.slane %v261_v61, 4 }
 0x20e   :  { %v263_v63 = vadd.f32 %v262_v62, %v261_v61 }
 0x20f   :  { %v343_v28 = vpop.xlane.xlu0 %342 }
 0x210   :  { %v264_v1 = vrot.slane %v263_v63, 2  ;;  %v344_v29 = vrot.slane %v343_v28, 4 }
 0x212   :  { %v265_v2 = vadd.f32 %v264_v1, %v263_v63  ;;  %v345_v30 = vadd.f32 %v344_v29, %v343_v28  ;;  %v733_v28 = vld [vmem:[#allocation13 + $0x98] sm:$0xff]  ;;  %v732_v29 = vld [vmem:[#allocation13 + $0x90] sm:$0xff] }
 0x214   :  { %v266_v4 = vrot.slane %v265_v2, 1  ;;  %v346_v35 = vrot.slane %v345_v30, 2 }
 0x216   :  { %v267_v5 = vadd.f32 %v266_v4, %v265_v2  ;;  %v347_v39 = vadd.f32 %v346_v35, %v345_v30  ;;  %v731_v30 = vld [vmem:[#allocation13 + $0x88] sm:$0xff]  ;;  %v730_v35 = vld [vmem:[#allocation13 + $0x80] sm:$0xff] }
 0x218   :  { %1478 = vpush %v267_v5  ;;  %v348_v42 = vrot.slane %v347_v39, 1 }
 0x219   :  { %1480 = vpush %v295_v6 }
 0x21a   :  { %v349_v45 = vadd.f32 %v348_v42, %v347_v39  ;;  %v726_v39 = vld [vmem:[#allocation13 + $0x60] sm:$0xff]  ;;  %v723_v42 = vld [vmem:[#allocation13 + $0x48] sm:$0xff] }
 0x249   :  { %s2047_s11 = spop %1478 }
 0x24a   :  { %s1481_s5 = spop %1480  ;;  %v269_v48 = vstv %s2047_s11 }
 0x24b   :  { %v297_v7 = vstv %s1481_s5  ;;  %v270_v51 = vmul.f32 0.0015625, %v269_v48 }
 0x24c   :  { %v298_v8 = vmul.f32 0.0015625, %v297_v7 }
 0x24d   :  { %v271_v61 = vadd.f32 1e-05, %v270_v51 }
 0x24e   :  { %v2050_v9 = vsub.f32 %v1995_v11, %v298_v8  ;;  %v2053_v10 = vsub.f32 %v1997_v12, %v298_v8  ;;  %v2056_v13 = vsub.f32 %v2003_v15, %v298_v8  ;;  %v2059_v14 = vsub.f32 %v2005_v17, %v298_v8 }
 0x250   :  { %v303_v16 = vmul.f32 %v2050_v9, %v2050_v9  ;;  %v304_v18 = vmul.f32 %v2053_v10, %v2053_v10  ;;  %v305_v19 = vmul.f32 %v2056_v13, %v2056_v13  ;;  %v306_v11 = vmul.f32 %v2059_v14, %v2059_v14 }
 0x252   :  { %v307_v12 = vsel %vm225_vm0, %v303_v16, 0.0  ;;  %v308_v15 = vsel %vm225_vm0, %v304_v18, 0.0  ;;  %v310_v17 = vsel %vm225_vm0, %v305_v19, 0.0  ;;  %v312_v22 = vsel %vm225_vm0, %v306_v11, 0.0  ;;  %v386_v16 = vld [vmem:[#allocation7 + $0x8] sm:$0xff]  ;;  %v385_v19 = vld [vmem:[#allocation7] sm:$0xff] }
 0x253   :  { %v309_v20 = vadd.f32 %v308_v15, %v307_v12  ;;  %v594_v12 = vld [vmem:[#allocation10 + $0x10] sm:$0xf]  ;;  %v592_v15 = vld [vmem:[#allocation10] sm:$0xff] }
 0x255   :  { %v311_v21 = vadd.f32 %v310_v17, %v309_v20  ;;  %v743_v20 = vld [vmem:[#allocation13 + $0xe8] sm:$0xff]  ;;  %v742_v17 = vld [vmem:[#allocation13 + $0xe0] sm:$0xff] }
 0x257   :  { %v313_v23 = vadd.f32 %v312_v22, %v311_v21  ;;  %v740_v21 = vld [vmem:[#allocation13 + $0xd0] sm:$0xff]  ;;  %v739_v22 = vld [vmem:[#allocation13 + $0xc8] sm:$0xff] }
 0x259   :  { %314 = vadd.xlane.f32.xlu1 %v313_v23  ;;  %v738_v23 = vld [vmem:[#allocation13 + $0xc0] sm:$0xff] }
 0x2e2   :  { %v315_v36 = vpop.xlane.xlu1 %314 }
 0x2e3   :  { %v316_v37 = vrot.slane %v315_v36, 4 }
 0x2e5   :  { %v317_v38 = vadd.f32 %v316_v37, %v315_v36  ;;  %v729_v36 = vld [vmem:[#allocation13 + $0x78] sm:$0xff]  ;;  %v728_v37 = vld [vmem:[#allocation13 + $0x70] sm:$0xff] }
 0x2e7   :  { %v318_v40 = vrot.slane %v317_v38, 2 }
 0x2e9   :  { %v319_v41 = vadd.f32 %v318_v40, %v317_v38  ;;  %v727_v38 = vld [vmem:[#allocation13 + $0x68] sm:$0xff]  ;;  %v725_v40 = vld [vmem:[#allocation13 + $0x58] sm:$0xff] }
 0x2eb   :  { %v320_v43 = vrot.slane %v319_v41, 1 }
 0x2ed   :  { %v321_v44 = vadd.f32 %v320_v43, %v319_v41  ;;  %v724_v41 = vld [vmem:[#allocation13 + $0x50] sm:$0xff] }
 0x2ef   :  { %1482 = vpush %v321_v44 }
 0x2f0   :  { %1484 = vpush %v349_v45 }
 0x320   :  { %s1483_s28 = spop %1482 }
 0x321   :  { %v323_v49 = vstv %s1483_s28  ;;  %s1485_s4 = spop %1484 }
 0x322   :  { %v324_v52 = vmul.f32 0.0015625, %v323_v49  ;;  %v351_v54 = vstv %s1485_s4 }
 0x323   :  { %v352_v55 = vmul.f32 0.0015625, %v351_v54 }
 0x324   :  { %v325_v56 = vadd.f32 1e-05, %v324_v52 }
 0x325   :  { %v2078_v57 = vsub.f32 %v2031_v46, %v352_v55  ;;  %v2081_v58 = vsub.f32 %v2033_v47, %v352_v55  ;;  %v2084_v59 = vsub.f32 %v2039_v50, %v352_v55  ;;  %v2087_v60 = vsub.f32 %v2043_v53, %v352_v55 }
 0x326   :  { %1507 = vrsqrt.f32 %v325_v56 }
 0x327   :  { %v357_v62 = vmul.f32 %v2078_v57, %v2078_v57  ;;  %v358_v63 = vmul.f32 %v2081_v58, %v2081_v58  ;;  %v359_v46 = vmul.f32 %v2084_v59, %v2084_v59  ;;  %v360_v47 = vmul.f32 %v2087_v60, %v2087_v60 }
 0x328   :  { %1509 = vrsqrt.f32 %v271_v61 }
 0x329   :  { %v361_v50 = vsel %vm225_vm0, %v357_v62, 0.0  ;;  %v362_v0 = vsel %vm225_vm0, %v358_v63, 0.0  ;;  %v364_v1 = vsel %vm225_vm0, %v359_v46, 0.0  ;;  %v366_v3 = vsel %vm225_vm0, %v360_v47, 0.0 }
 0x32a   :  { %v363_v53 = vadd.f32 %v362_v0, %v361_v50  ;;  %v722_v50 = vld [vmem:[#allocation13 + $0x40] sm:$0xff]  ;;  %v721_v0 = vld [vmem:[#allocation13 + $0x38] sm:$0xff] }
 0x32c   :  { %v365_v2 = vadd.f32 %v364_v1, %v363_v53  ;;  %v720_v53 = vld [vmem:[#allocation13 + $0x30] sm:$0xff]  ;;  %v717_v1 = vld [vmem:[#allocation13 + $0x18] sm:$0xff] }
 0x32e   :  { %v367_v4 = vadd.f32 %v366_v3, %v365_v2  ;;  %v715_v2 = vld [vmem:[#allocation13 + $0x8] sm:$0xff]  ;;  %v714_v3 = vld [vmem:[#allocation13] sm:$0xff] }
 0x330   :  { %368 = vadd.xlane.f32.xlu1 %v367_v4  ;;  %v886_v4 = vld [vmem:[#allocation14 + $0xf8] sm:$0xff] }
 0x333   :  { %v1508_v5 = vpop.eup %1507 }
 0x334   :  { %v327_v6 = vmul.f32 %v1508_v5, %v2050_v9  ;;  %v328_v7 = vmul.f32 %v1508_v5, %v2053_v10  ;;  %v329_v8 = vmul.f32 %v1508_v5, %v2056_v13  ;;  %v330_v11 = vmul.f32 %v1508_v5, %v2059_v14  ;;  %v885_v5 = vld [vmem:[#allocation14 + $0xf0] sm:$0xff] }
 0x335   :  { %v1510_v18 = vpop.eup %1509 }
 0x336   :  { %1408 = vmatprep.mubr.msk.f32.mxu0 %vm225_vm0, %v327_v6  ;;  %v273_v9 = vmul.f32 %v1510_v18, %v2011_v31  ;;  %v274_v10 = vmul.f32 %v1510_v18, %v2013_v32  ;;  %v275_v13 = vmul.f32 %v1510_v18, %v2015_v33  ;;  %v276_v14 = vmul.f32 %v1510_v18, %v2017_v34  ;;  %v593_v31 = vld [vmem:[#allocation10 + $0x8] sm:$0xff]  ;;  %v745_v32 = vld [vmem:[#allocation13 + $0xf8] sm:$0xff] }
 0x337   :  { %1409 = vmatmul.mubr.msk.f32.vlgmr.msra.gmra.mxu0 %vm225_vm0, %v328_v7  ;;  %v744_v33 = vld [vmem:[#allocation13 + $0xf0] sm:$0xff]  ;;  %758 = vmatprep.subr.mxu1 %v745_v32  ;;  %v741_v34 = vld [vmem:[#allocation13 + $0xd8] sm:$0xff]  ;;  %v884_v6 = vld [vmem:[#allocation14 + $0xe8] sm:$0xff] }
 0x338   :  { %1411 = vmatprep.mubr.msk.f32.mxu0 %vm225_vm0, %v329_v8  ;;  %1415 = vmatpush3.msk.msra.mxu0 %vm403_vm1, %v387_v27  ;;  %v734_v27 = vld [vmem:[#allocation13 + $0xa0] sm:$0xff]  ;;  %v882_v8 = vld [vmem:[#allocation14 + $0xd8] sm:$0xff]  ;;  %v880_v18 = vld [vmem:[#allocation14 + $0xc8] sm:$0xff] }
 0x339   :  { %1416 = vmatprep.subr.mxu0 %v386_v16  ;;  %759 = vmatpush1.msra.mxu1 %v744_v33  ;;  %v883_v7 = vld [vmem:[#allocation14 + $0xe0] sm:$0xff]  ;;  %v870_v32 = vld [vmem:[#allocation14 + $0x78] sm:$0xff]  ;;  %v869_v33 = vld [vmem:[#allocation14 + $0x70] sm:$0xff] }
 0x33a   :  { %1417 = vmatpush3.msra.mxu0 %v386_v16  ;;  %760 = vmatprep.subr.mxu1 %v743_v20  ;;  %v881_v16 = vld [vmem:[#allocation14 + $0xd0] sm:$0xff]  ;;  %v868_v20 = vld [vmem:[#allocation14 + $0x68] sm:$0xff] }
 0x33b   :  { %1412 = vmatmul.mubr.msk.f32.gmra.mxu0 %vm225_vm0, %v330_v11  ;;  %1418 = vmatprep.subr.mxu0 %v385_v19  ;;  %v878_v11 = vld [vmem:[#allocation14 + $0xb8] sm:$0xff] }
 0x33c   :  { %1420 = vmatprep.mubr.msk.f32.mxu0 %vm225_vm0, %v273_v9  ;;  %1419 = vmatpush3.msra.mxu0 %v385_v19  ;;  %v879_v19 = vld [vmem:[#allocation14 + $0xc0] sm:$0xff]  ;;  %v877_v9 = vld [vmem:[#allocation14 + $0xb0] sm:$0xff] }
 0x33d   :  { %1426 = vmatprep.subr.msk.mxu0 %vm403_vm1, %v594_v12  ;;  %761 = vmatpush1.msra.mxu1 %v742_v17  ;;  %v867_v17 = vld [vmem:[#allocation14 + $0x60] sm:$0xff] }
 0x33e   :  { %762 = vmatprep.subr.mxu1 %v741_v34  ;;  %v866_v34 = vld [vmem:[#allocation14 + $0x58] sm:$0xff] }
 0x33f   :  { %1421 = vmatmul.mubr.msk.f32.vlgmr.msra.gmra.mxu0 %vm225_vm0, %v274_v10  ;;  %763 = vmatpush1.msra.mxu1 %v740_v21  ;;  %v876_v10 = vld [vmem:[#allocation14 + $0xa8] sm:$0xff]  ;;  %v865_v21 = vld [vmem:[#allocation14 + $0x50] sm:$0xff] }
 0x340   :  { %1423 = vmatprep.mubr.msk.f32.mxu0 %vm225_vm0, %v275_v13  ;;  %1427 = vmatpush3.msk.msra.mxu0 %vm403_vm1, %v594_v12  ;;  %v875_v13 = vld [vmem:[#allocation14 + $0xa0] sm:$0xff]  ;;  %v873_v12 = vld [vmem:[#allocation14 + $0x90] sm:$0xff] }
 0x341   :  { %1428 = vmatprep.subr.mxu0 %v593_v31  ;;  %764 = vmatprep.subr.mxu1 %v739_v22  ;;  %v864_v22 = vld [vmem:[#allocation14 + $0x48] sm:$0xff] }
 0x342   :  { %1429 = vmatpush3.msra.mxu0 %v593_v31  ;;  %765 = vmatpush1.msra.mxu1 %v738_v23  ;;  %v872_v31 = vld [vmem:[#allocation14 + $0x88] sm:$0xff]  ;;  %v863_v23 = vld [vmem:[#allocation14 + $0x40] sm:$0xff] }
 0x343   :  { %1424 = vmatmul.mubr.msk.f32.gmra.mxu0 %vm225_vm0, %v276_v14  ;;  %1430 = vmatprep.subr.mxu0 %v592_v15  ;;  %v874_v14 = vld [vmem:[#allocation14 + $0x98] sm:$0xff] }
 0x344   :  { %1431 = vmatpush3.msra.mxu0 %v592_v15  ;;  %766 = vmatprep.subr.mxu1 %v737_v24  ;;  %v871_v15 = vld [vmem:[#allocation14 + $0x80] sm:$0xff]  ;;  %v862_v24 = vld [vmem:[#allocation14 + $0x38] sm:$0xff] }
 0x345   :  { %767 = vmatpush1.msra.mxu1 %v736_v25  ;;  %931 = vmatprep.subr.mxu0 %v886_v4  ;;  %v861_v25 = vld [vmem:[#allocation14 + $0x30] sm:$0xff] }
 0x346   :  { %768 = vmatprep.subr.mxu1 %v735_v26  ;;  %v860_v26 = vld [vmem:[#allocation14 + $0x28] sm:$0xff] }
 0x347   :  { %769 = vmatpush1.msra.mxu1 %v734_v27  ;;  %v859_v27 = vld [vmem:[#allocation14 + $0x20] sm:$0xff] }
 0x348   :  { %770 = vmatprep.subr.mxu1 %v733_v28  ;;  %v858_v28 = vld [vmem:[#allocation14 + $0x18] sm:$0xff] }
 0x349   :  { %771 = vmatpush1.msra.mxu1 %v732_v29  ;;  %v857_v29 = vld [vmem:[#allocation14 + $0x10] sm:$0xff] }
 0x34a   :  { %772 = vmatprep.subr.mxu1 %v731_v30  ;;  %v856_v30 = vld [vmem:[#allocation14 + $0x8] sm:$0xff] }
 0x34b   :  { %773 = vmatpush1.msra.mxu1 %v730_v35  ;;  %v855_v35 = vld [vmem:[#allocation14] sm:$0xff] }
 0x34c   :  { %774 = vmatprep.subr.mxu1 %v729_v36  ;;  %v918_v36 = vld [vmem:[#allocation14 + $0x1f8] sm:$0xff] }
 0x34d   :  { %775 = vmatpush1.msra.mxu1 %v728_v37  ;;  %v917_v37 = vld [vmem:[#allocation14 + $0x1f0] sm:$0xff] }
 0x34e   :  { %776 = vmatprep.subr.mxu1 %v727_v38  ;;  %v916_v38 = vld [vmem:[#allocation14 + $0x1e8] sm:$0xff] }
 0x34f   :  { %777 = vmatpush1.msra.mxu1 %v726_v39  ;;  %v915_v39 = vld [vmem:[#allocation14 + $0x1e0] sm:$0xff] }
 0x350   :  { %778 = vmatprep.subr.mxu1 %v725_v40  ;;  %v914_v40 = vld [vmem:[#allocation14 + $0x1d8] sm:$0xff] }
 0x351   :  { %779 = vmatpush1.msra.mxu1 %v724_v41  ;;  %v913_v41 = vld [vmem:[#allocation14 + $0x1d0] sm:$0xff] }
 0x352   :  { %780 = vmatprep.subr.mxu1 %v723_v42  ;;  %v912_v42 = vld [vmem:[#allocation14 + $0x1c8] sm:$0xff] }
 0x353   :  { %781 = vmatpush1.msra.mxu1 %v722_v50  ;;  %v896_v50 = vld [vmem:[#allocation14 + $0x148] sm:$0xff] }
 0x354   :  { %782 = vmatprep.subr.mxu1 %v721_v0  ;;  %v895_v0 = vld [vmem:[#allocation14 + $0x140] sm:$0xff] }
 0x355   :  { %783 = vmatpush1.msra.mxu1 %v720_v53 }
 0x3b9   :  { %v369_v43 = vpop.xlane.xlu1 %368 }
 0x3ba   :  { %v370_v44 = vrot.slane %v369_v43, 4 }
 0x3bc   :  { %v371_v45 = vadd.f32 %v370_v44, %v369_v43  ;;  %v911_v43 = vld [vmem:[#allocation14 + $0x1c0] sm:$0xff]  ;;  %v910_v44 = vld [vmem:[#allocation14 + $0x1b8] sm:$0xff] }
 0x3be   :  { %v372_v48 = vrot.slane %v371_v45, 2 }
 0x3c0   :  { %v373_v49 = vadd.f32 %v372_v48, %v371_v45  ;;  %v909_v45 = vld [vmem:[#allocation14 + $0x1b0] sm:$0xff]  ;;  %v908_v48 = vld [vmem:[#allocation14 + $0x1a8] sm:$0xff] }
 0x3c2   :  { %v374_v51 = vrot.slane %v373_v49, 1 }
 0x3c4   :  { %v375_v52 = vadd.f32 %v374_v51, %v373_v49  ;;  %v907_v49 = vld [vmem:[#allocation14 + $0x1a0] sm:$0xff]  ;;  %v906_v51 = vld [vmem:[#allocation14 + $0x198] sm:$0xff] }
 0x3c6   :  { %1486 = vpush %v375_v52  ;;  %v905_v52 = vld [vmem:[#allocation14 + $0x190] sm:$0xff] }
 0x3f7   :  { %s1487_s24 = spop %1486  ;;  %v1410_v53 = vpop.f32.mrf.mxu0 }
 0x3f8   :  { %v377_v54 = vstv %s1487_s24 }
 0x3f9   :  { %v378_v55 = vmul.f32 0.0015625, %v377_v54  ;;  %v904_v54 = vld [vmem:[#allocation14 + $0x188] sm:$0xff] }
 0x3fb   :  { %v379_v56 = vadd.f32 1e-05, %v378_v55  ;;  %v903_v55 = vld [vmem:[#allocation14 + $0x180] sm:$0xff] }
 0x3fd   :  { %1511 = vrsqrt.f32 %v379_v56  ;;  %v902_v56 = vld [vmem:[#allocation14 + $0x178] sm:$0xff] }
 0x40a   :  { %v1512_v61 = vpop.eup %1511 }
 0x40b   :  { %v381_v62 = vmul.f32 %v1512_v61, %v2078_v57  ;;  %v382_v63 = vmul.f32 %v1512_v61, %v2081_v58  ;;  %v383_v46 = vmul.f32 %v1512_v61, %v2084_v59  ;;  %v384_v47 = vmul.f32 %v1512_v61, %v2087_v60  ;;  %v719_v57 = vld [vmem:[#allocation13 + $0x28] sm:$0xff]  ;;  %v718_v58 = vld [vmem:[#allocation13 + $0x20] sm:$0xff]  ;;  %v716_v59 = vld [vmem:[#allocation13 + $0x10] sm:$0xff] }
 0x40c   :  { %784 = vmatprep.subr.mxu1 %v719_v57  ;;  %v1826_v60 = vmov 0.0   ;;  %v901_v61 = vld [vmem:[#allocation14 + $0x170] sm:$0xff]  ;;  %v473_v57 = vpop.f32.mrf.mxu0 }
 0x40d   :  { %1432 = vmatprep.mubr.msk.f32.mxu0 %vm225_vm0, %v381_v62  ;;  %785 = vmatpush1.msra.mxu1 %v718_v58  ;;  %v900_v62 = vld [vmem:[#allocation14 + $0x168] sm:$0xff] }
 0x40e   :  { %1433 = vmatmul.mubr.msk.f32.vlgmr.msra.gmra.mxu0 %vm225_vm0, %v382_v63  ;;  %786 = vmatprep.subr.mxu1 %v717_v1  ;;  %v899_v63 = vld [vmem:[#allocation14 + $0x160] sm:$0xff]  ;;  %v1413_v58 = vpop.f32.mrf.mxu0 }
 0x40f   :  { %1435 = vmatprep.mubr.msk.f32.mxu0 %vm225_vm0, %v383_v46  ;;  %787 = vmatpush1.msra.mxu1 %v716_v59  ;;  %v898_v46 = vld [vmem:[#allocation14 + $0x158] sm:$0xff] }
 0x410   :  { %788 = vmatprep.subr.mxu1 %v715_v2  ;;  %822 = vmatprep.mubr.f32.mxu1 %v1826_v60  ;;  %v483_v1 = vpop.f32.mrf.mxu0 }
 0x411   :  { %789 = vmatpush1.msra.mxu1 %v714_v3  ;;  %932 = vmatpush1.msra.mxu0 %v885_v5 }
 0x412   :  { %1436 = vmatmul.mubr.msk.f32.gmra.mxu0 %vm225_vm0, %v384_v47  ;;  %933 = vmatprep.subr.mxu0 %v884_v6  ;;  %v897_v47 = vld [vmem:[#allocation14 + $0x150] sm:$0xff]  ;;  %v1422_v59 = vpop.f32.mrf.mxu0 }
 0x413   :  { %934 = vmatpush1.msra.mxu0 %v883_v7  ;;  %v579_v6 = vadd.f32 %v1422_v59, %v1410_v53  ;;  %v746_v53 = vld [vmem:[%s2161_s8] sm:$0x3]  ;;  %s1827_s8 = smov [#allocation23]  }
 0x414   :  { %935 = vmatprep.subr.mxu0 %v882_v8  ;;  %v573_v2 = vpop.f32.mrf.mxu0  ;;  %s1277_s13 = sshll.u32 %s1827_s8, 4  ;;  %s1278_s13 = int_to_ptr.vmem [resolvable:$true] %s1277_s13 }
 0x415   :  { %936 = vmatpush1.msra.mxu0 %v881_v16  ;;  %v574_v7 = vadd.f32 %v573_v2, %v473_v57  ;;  %s1773_s6 = scalar_lea.vmem %s1278_s13, 512  ;;  %p1778_p10 = scmp.lt.s32.totalorder %s1278_s13, %s1278_s13 }
 0x416   :  { %937 = vmatprep.subr.mxu0 %v880_v18  ;;  %v1425_v3 = vpop.f32.mrf.mxu0  ;;  %p1774_p9 = scmp.ne.s32.totalorder %s1278_s13, %s1773_s6  ;;  %p1779_p11 = scmp.lt.s32.totalorder %s1773_s6, %s1773_s6 }
 0x417   :  { %938 = vmatpush1.msra.mxu0 %v879_v19  ;;  %v1314_v19 = vld [vmem:[#allocation11] ss:$0 sm:$0xff] }
 0x418   :  { %939 = vmatprep.subr.mxu0 %v878_v11  ;;  %v583_v4 = vpop.f32.mrf.mxu0  ;;  %p1780_p12 = por %p1779_p11, %p1778_p10 }
 0x419   :  { %940 = vmatpush1.msra.mxu0 %v877_v9  ;;  %v584_v9 = vadd.f32 %v583_v4, %v483_v1 }
 0x41a   :  { %941 = vmatprep.subr.mxu0 %v876_v10  ;;  %p1781_p13 = pnand %p1780_p12, %p1774_p9 }
 0x41b   :  { %942 = vmatpush1.msra.mxu0 %v875_v13 }
 0x41c   :  { %943 = vmatprep.subr.mxu0 %v874_v14 }
 0x41d   :  { %944 = vmatpush1.msra.mxu0 %v873_v12 }
 0x41e   :  { %945 = vmatprep.subr.mxu0 %v872_v31 }
 0x41f   :  { %946 = vmatpush1.msra.mxu0 %v871_v15  ;;  %v589_v15 = vadd.f32 %v1425_v3, %v1413_v58 }
 0x420   :  { %947 = vmatprep.subr.mxu0 %v870_v32 }
 0x421   :  { %948 = vmatpush1.msra.mxu0 %v869_v33 }
 0x422   :  { %949 = vmatprep.subr.mxu0 %v868_v20 }
 0x423   :  { %950 = vmatpush1.msra.mxu0 %v867_v17 }
 0x424   :  { %951 = vmatprep.subr.mxu0 %v866_v34 }
 0x425   :  { %952 = vmatpush1.msra.mxu0 %v865_v21 }
 0x426   :  { %953 = vmatprep.subr.mxu0 %v864_v22  ;;  %v894_v22 = vld [vmem:[#allocation14 + $0x138] sm:$0xff] }
 0x427   :  { %954 = vmatpush1.msra.mxu0 %v863_v23  ;;  %v893_v23 = vld [vmem:[#allocation14 + $0x130] sm:$0xff] }
 0x428   :  { %955 = vmatprep.subr.mxu0 %v862_v24  ;;  %v892_v24 = vld [vmem:[#allocation14 + $0x128] sm:$0xff] }
 0x429   :  { %956 = vmatpush1.msra.mxu0 %v861_v25  ;;  %v891_v25 = vld [vmem:[#allocation14 + $0x120] sm:$0xff] }
 0x42a   :  { %957 = vmatprep.subr.mxu0 %v860_v26  ;;  %v890_v26 = vld [vmem:[#allocation14 + $0x118] sm:$0xff] }
 0x42b   :  { %958 = vmatpush1.msra.mxu0 %v859_v27  ;;  %v889_v27 = vld [vmem:[#allocation14 + $0x110] sm:$0xff] }
 0x42c   :  { %959 = vmatprep.subr.mxu0 %v858_v28  ;;  %v888_v28 = vld [vmem:[#allocation14 + $0x108] sm:$0xff] }
 0x42d   :  { %960 = vmatpush1.msra.mxu0 %v857_v29  ;;  %v887_v29 = vld [vmem:[#allocation14 + $0x100] sm:$0xff] }
 0x42e   :  { %961 = vmatprep.subr.mxu0 %v856_v30  ;;  %v1059_v30 = vld [vmem:[#allocation17 + $0xf8] sm:$0xff] }
 0x42f   :  { %962 = vmatpush1.msra.mxu0 %v855_v35  ;;  %v1058_v35 = vld [vmem:[#allocation17 + $0xf0] sm:$0xff]  ;;  %1338 = vmatprep.subr.mxu1 %v1059_v30  ;;  %v919_v30 = vld [vmem:[#allocation16] sm:$0x3] }
 0x430   :  { %963 = vmatprep.subr.mxu0 %v918_v36  ;;  %v1042_v36 = vld [vmem:[#allocation17 + $0x70] sm:$0xff] }
 0x431   :  { %964 = vmatpush2.msra.mxu0 %v917_v37  ;;  %v1057_v37 = vld [vmem:[#allocation17 + $0xe8] sm:$0xff] }
 0x432   :  { %965 = vmatprep.subr.mxu0 %v916_v38  ;;  %v1041_v38 = vld [vmem:[#allocation17 + $0x68] sm:$0xff] }
 0x433   :  { %966 = vmatpush2.msra.mxu0 %v915_v39  ;;  %v1056_v39 = vld [vmem:[#allocation17 + $0xe0] sm:$0xff] }
 0x434   :  { %967 = vmatprep.subr.mxu0 %v914_v40  ;;  %v1040_v40 = vld [vmem:[#allocation17 + $0x60] sm:$0xff] }
 0x435   :  { %968 = vmatpush2.msra.mxu0 %v913_v41  ;;  %v1055_v41 = vld [vmem:[#allocation17 + $0xd8] sm:$0xff] }
 0x436   :  { %969 = vmatprep.subr.mxu0 %v912_v42  ;;  %v1039_v42 = vld [vmem:[#allocation17 + $0x58] sm:$0xff] }
 0x437   :  { %970 = vmatpush2.msra.mxu0 %v911_v43  ;;  %v1054_v43 = vld [vmem:[#allocation17 + $0xd0] sm:$0xff] }
 0x438   :  { %971 = vmatprep.subr.mxu0 %v910_v44  ;;  %v1038_v44 = vld [vmem:[#allocation17 + $0x50] sm:$0xff] }
 0x439   :  { %972 = vmatpush2.msra.mxu0 %v909_v45  ;;  %v1053_v45 = vld [vmem:[#allocation17 + $0xc8] sm:$0xff] }
 0x43a   :  { %973 = vmatprep.subr.mxu0 %v908_v48  ;;  %v1037_v48 = vld [vmem:[#allocation17 + $0x48] sm:$0xff] }
 0x43b   :  { %974 = vmatpush2.msra.mxu0 %v907_v49  ;;  %v1052_v49 = vld [vmem:[#allocation17 + $0xc0] sm:$0xff] }
 0x43c   :  { %975 = vmatprep.subr.mxu0 %v906_v51  ;;  %v1036_v51 = vld [vmem:[#allocation17 + $0x40] sm:$0xff] }
 0x43d   :  { %976 = vmatpush2.msra.mxu0 %v905_v52  ;;  %v1051_v52 = vld [vmem:[#allocation17 + $0xb8] sm:$0xff] }
 0x43e   :  { %977 = vmatprep.subr.mxu0 %v904_v54  ;;  %v1035_v54 = vld [vmem:[#allocation17 + $0x38] sm:$0xff] }
 0x43f   :  { %978 = vmatpush2.msra.mxu0 %v903_v55  ;;  %v1050_v55 = vld [vmem:[#allocation17 + $0xb0] sm:$0xff] }
 0x440   :  { %979 = vmatprep.subr.mxu0 %v902_v56  ;;  %v1034_v56 = vld [vmem:[#allocation17 + $0x30] sm:$0xff] }
 0x441   :  { %980 = vmatpush2.msra.mxu0 %v901_v61  ;;  %v1049_v61 = vld [vmem:[#allocation17 + $0xa8] sm:$0xff] }
 0x442   :  { %981 = vmatprep.subr.mxu0 %v900_v62  ;;  %v1033_v62 = vld [vmem:[#allocation17 + $0x28] sm:$0xff] }
 0x443   :  { %982 = vmatpush2.msra.mxu0 %v899_v63  ;;  %v1048_v63 = vld [vmem:[#allocation17 + $0xa0] sm:$0xff] }
 0x444   :  { %983 = vmatprep.subr.mxu0 %v898_v46  ;;  %v1032_v46 = vld [vmem:[#allocation17 + $0x20] sm:$0xff] }
 0x445   :  { %984 = vmatpush2.msra.mxu0 %v897_v47  ;;  %v748_v47 = vlaneseq }
 0x446   :  { %985 = vmatprep.subr.mxu0 %v896_v50 }
 0x447   :  { %986 = vmatpush2.msra.mxu0 %v895_v0  ;;  %v749_v50 = vshrl.u32 %v748_v47, 7  ;;  %v1171_v47 = vld [vmem:[#allocation20 + $0x58] sm:$0xff] }
 0x448   :  { %987 = vmatprep.subr.mxu0 %v894_v22  ;;  %v1031_v22 = vld [vmem:[#allocation17 + $0x18] sm:$0xff] }
 0x449   :  { %988 = vmatpush2.msra.mxu0 %v893_v23  ;;  %v750_v0 = vsub.s32 0, %v749_v50  ;;  %v754_v57 = vsub.s32 1, %v749_v50  ;;  %v1046_v23 = vld [vmem:[#allocation17 + $0x90] sm:$0xff] }
 0x44a   :  { %989 = vmatprep.subr.mxu0 %v892_v24  ;;  %v1030_v24 = vld [vmem:[#allocation17 + $0x10] sm:$0xff] }
 0x44b   :  { %990 = vmatpush2.msra.mxu0 %v891_v25  ;;  %v751_v58 = vrot.slane %v746_v53, %v750_v0  ;;  %v755_v1 = vrot.slane %v746_v53, %v754_v57  ;;  %v1045_v25 = vld [vmem:[#allocation17 + $0x88] sm:$0xff] }
 0x44c   :  { %991 = vmatprep.subr.mxu0 %v890_v26  ;;  %v1029_v26 = vld [vmem:[#allocation17 + $0x8] sm:$0xff] }
 0x44d   :  { %992 = vmatpush2.msra.mxu0 %v889_v27  ;;  %v1044_v27 = vld [vmem:[#allocation17 + $0x80] sm:$0xff] }
 0x44e   :  { %993 = vmatprep.subr.mxu0 %v888_v28  ;;  %v1028_v28 = vld [vmem:[#allocation17] sm:$0xff] }
 0x44f   :  { %994 = vmatpush2.msra.mxu0 %v887_v29  ;;  %v1175_v29 = vld [vmem:[#allocation20 + $0x78] sm:$0xff] }
 0x4ce   :  { %v1434_v5 = vpop.f32.mrf.mxu0 }
 0x4cf   :  { %v696_v16 = vadd.f32 %v1434_v5, %v579_v6 }
 0x4d0   :  { %v676_v8 = vpop.f32.mrf.mxu0 }
 0x4d1   :  { %v695_v18 = vadd.f32 %v676_v8, %v574_v7  ;;  %v707_v14 = vadd.f32 %v1314_v19, %v696_v16 }
 0x4d2   :  { %v1437_v11 = vpop.f32.mrf.mxu0 }
 0x4d3   :  { %v706_v10 = vadd.f32 %v1314_v19, %v695_v18  ;;  %v711_v32 = vmax.f32 %v707_v14, 0.0  ;;  %v698_v33 = vadd.f32 %v1437_v11, %v589_v15 }
 0x4d4   :  { %v686_v13 = vpop.f32.mrf.mxu0 }
 0x4d5   :  { %v710_v12 = vmax.f32 %v706_v10, 0.0  ;;  %v697_v31 = vadd.f32 %v686_v13, %v584_v9  ;;  %v709_v17 = vadd.f32 %v1314_v19, %v698_v33 }
 0x4d7   :  { %823 = vmatmul.mubr.f32.vlgmr.msra.gmra.mxu1 %v710_v12  ;;  %v708_v20 = vadd.f32 %v1314_v19, %v697_v31  ;;  %v713_v21 = vmax.f32 %v709_v17, 0.0 }
 0x4d8   :  { %828 = vmatprep.mubr.f32.mxu1 %v1826_v60 }
 0x4d9   :  { %v712_v34 = vmax.f32 %v708_v20, 0.0 }
 0x4db   :  { %829 = vmatmul.mubr.f32.gmra.mxu1 %v711_v32 }
 0x4dc   :  { %834 = vmatprep.mubr.f32.mxu1 %v1826_v60 }
 0x4df   :  { %835 = vmatmul.mubr.f32.gmra.mxu1 %v712_v34 }
 0x4e0   :  { %840 = vmatprep.mubr.f32.mxu1 %v1826_v60  ;;  %v1043_v60 = vld [vmem:[#allocation17 + $0x78] sm:$0xff] }
 0x4e1   :  { %1339 = vmatpush3.msra.mxu1 %v1043_v60  ;;  %v924_v60 = vrot.slane %v919_v30, %v750_v0 }
 0x4e2   :  { %1340 = vmatprep.subr.mxu1 %v1058_v35  ;;  %v928_v35 = vrot.slane %v919_v30, %v754_v57 }
 0x4e3   :  { %841 = vmatmul.mubr.f32.gmra.mxu1 %v713_v21  ;;  %v1047_v21 = vld [vmem:[#allocation17 + $0x98] sm:$0xff] }
 0x4e4   :  { %1341 = vmatpush3.msra.mxu1 %v1042_v36 }
 0x4e5   :  { %1342 = vmatprep.subr.mxu1 %v1057_v37 }
 0x4e6   :  { %1343 = vmatpush3.msra.mxu1 %v1041_v38 }
 0x4e7   :  { %1344 = vmatprep.subr.mxu1 %v1056_v39 }
 0x4e8   :  { %1345 = vmatpush3.msra.mxu1 %v1040_v40 }
 0x4e9   :  { %1346 = vmatprep.subr.mxu1 %v1055_v41 }
 0x4ea   :  { %1347 = vmatpush3.msra.mxu1 %v1039_v42 }
 0x4eb   :  { %1348 = vmatprep.subr.mxu1 %v1054_v43 }
 0x4ec   :  { %1349 = vmatpush3.msra.mxu1 %v1038_v44 }
 0x4ed   :  { %1350 = vmatprep.subr.mxu1 %v1053_v45 }
 0x4ee   :  { %1351 = vmatpush3.msra.mxu1 %v1037_v48  ;;  %v1174_v48 = vld [vmem:[#allocation20 + $0x70] sm:$0xff] }
 0x4ef   :  { %1352 = vmatprep.subr.mxu1 %v1052_v49 }
 0x4f0   :  { %1353 = vmatpush3.msra.mxu1 %v1036_v51 }
 0x4f1   :  { %1354 = vmatprep.subr.mxu1 %v1051_v52  ;;  %v1173_v52 = vld [vmem:[#allocation20 + $0x68] sm:$0xff] }
 0x4f2   :  { %1355 = vmatpush3.msra.mxu1 %v1035_v54 }
 0x4f3   :  { %1356 = vmatprep.subr.mxu1 %v1050_v55 }
 0x4f4   :  { %1357 = vmatpush3.msra.mxu1 %v1034_v56 }
 0x4f5   :  { %1358 = vmatprep.subr.mxu1 %v1049_v61 }
 0x4f6   :  { %1359 = vmatpush3.msra.mxu1 %v1033_v62  ;;  %v1172_v62 = vld [vmem:[#allocation20 + $0x60] sm:$0xff] }
 0x4f7   :  { %1360 = vmatprep.subr.mxu1 %v1048_v63 }
 0x4f8   :  { %1361 = vmatpush3.msra.mxu1 %v1032_v46 }
 0x4f9   :  { %1362 = vmatprep.subr.mxu1 %v1047_v21 }
 0x4fa   :  { %1363 = vmatpush3.msra.mxu1 %v1031_v22 }
 0x4fb   :  { %1364 = vmatprep.subr.mxu1 %v1046_v23 }
 0x4fc   :  { %1365 = vmatpush3.msra.mxu1 %v1030_v24 }
 0x4fd   :  { %1366 = vmatprep.subr.mxu1 %v1045_v25 }
 0x4fe   :  { %1367 = vmatpush3.msra.mxu1 %v1029_v26 }
 0x4ff   :  { %1368 = vmatprep.subr.mxu1 %v1044_v27 }
 0x500   :  { %1369 = vmatpush3.msra.mxu1 %v1028_v28 }
 0x501   :  { %1438 = vmatprep.subr.mxu1 %v1175_v29 }
 0x597   :  { %v824_v59 = vpop.f32.mrf.mxu1 }
 0x598   :  { %v825_v2 = vadd.f32 %v824_v59, %v751_v58  ;;  %v1169_v59 = vld [vmem:[#allocation20 + $0x48] sm:$0xff] }
 0x599   :  { %v826_v3 = vpop.f32.mrf.mxu1 }
 0x59a   :  { %v827_v4 = vadd.f32 %v826_v3, %v755_v1  ;;  %v847_v7 = vmax.f32 %v825_v2, 0.0  ;;  %v1168_v3 = vld [vmem:[#allocation20 + $0x40] sm:$0xff] }
 0x59b   :  { %v830_v5 = vpop.f32.mrf.mxu1 }
 0x59c   :  { %v848_v6 = vmax.f32 %v827_v4, 0.0  ;;  %v831_v8 = vadd.f32 %v830_v5, %v751_v58  ;;  %v1167_v4 = vld [vmem:[#allocation20 + $0x38] sm:$0xff]  ;;  %v1166_v5 = vld [vmem:[#allocation20 + $0x30] sm:$0xff] }
 0x59d   :  { %v832_v16 = vpop.f32.mrf.mxu1 }
 0x59e   :  { %v833_v18 = vadd.f32 %v832_v16, %v755_v1  ;;  %995 = vmatprep.mubr.f32.mxu0 %v848_v6  ;;  %v849_v9 = vmax.f32 %v831_v8, 0.0  ;;  %v1165_v6 = vld [vmem:[#allocation20 + $0x28] sm:$0xff]  ;;  %v1163_v8 = vld [vmem:[#allocation20 + $0x18] sm:$0xff]  ;;  %v1162_v16 = vld [vmem:[#allocation20 + $0x10] sm:$0xff] }
 0x59f   :  { %v836_v19 = vpop.f32.mrf.mxu1  ;;  %996 = vmatmul.mubr.f32.vlgmr.msra.gmra.mxu0 %v847_v7  ;;  %v1164_v7 = vld [vmem:[#allocation20 + $0x20] sm:$0xff] }
 0x5a0   :  { %v850_v11 = vmax.f32 %v833_v18, 0.0  ;;  %v837_v10 = vadd.f32 %v836_v19, %v751_v58  ;;  %v1161_v18 = vld [vmem:[#allocation20 + $0x8] sm:$0xff]  ;;  %v1160_v19 = vld [vmem:[#allocation20] sm:$0xff] }
 0x5a1   :  { %v838_v13 = vpop.f32.mrf.mxu1 }
 0x5a2   :  { %v839_v14 = vadd.f32 %v838_v13, %v755_v1  ;;  %1001 = vmatprep.mubr.f32.mxu0 %v850_v11  ;;  %v851_v15 = vmax.f32 %v837_v10, 0.0 }
 0x5a3   :  { %v842_v12 = vpop.f32.mrf.mxu1  ;;  %1002 = vmatmul.mubr.f32.gmra.mxu0 %v849_v9  ;;  %v1315_v9 = vld [vmem:[#allocation19] ss:$0 sm:$0xff] }
 0x5a4   :  { %v852_v31 = vmax.f32 %v839_v14, 0.0  ;;  %v843_v32 = vadd.f32 %v842_v12, %v751_v58  ;;  %v1170_v58 = vld [vmem:[#allocation20 + $0x50] sm:$0xff] }
 0x5a5   :  { %v844_v33 = vpop.f32.mrf.mxu1 }
 0x5a6   :  { %v845_v20 = vadd.f32 %v844_v33, %v755_v1  ;;  %1007 = vmatprep.mubr.f32.mxu0 %v852_v31  ;;  %v853_v34 = vmax.f32 %v843_v32, 0.0 }
 0x5a7   :  { %1008 = vmatmul.mubr.f32.gmra.mxu0 %v851_v15 }
 0x5a8   :  { %v854_v17 = vmax.f32 %v845_v20, 0.0 }
 0x5aa   :  { %1013 = vmatprep.mubr.f32.mxu0 %v854_v17 }
 0x5ab   :  { %1014 = vmatmul.mubr.f32.gmra.mxu0 %v853_v34 }
 0x65f   :  { %v997_v36 = vpop.f32.mrf.mxu0 }
 0x660   :  { %v998_v37 = vadd.f32 %v997_v36, %v924_v60 }
 0x661   :  { %v999_v38 = vpop.f32.mrf.mxu0 }
 0x662   :  { %v1000_v39 = vadd.f32 %v999_v38, %v928_v35  ;;  %v1020_v42 = vmax.f32 %v998_v37, 0.0 }
 0x663   :  { %v1003_v40 = vpop.f32.mrf.mxu0 }
 0x664   :  { %v1021_v41 = vmax.f32 %v1000_v39, 0.0  ;;  %v1004_v43 = vadd.f32 %v1003_v40, %v924_v60 }
 0x665   :  { %v1005_v44 = vpop.f32.mrf.mxu0 }
 0x666   :  { %v1006_v45 = vadd.f32 %v1005_v44, %v928_v35  ;;  %1131 = vmatprep.mubr.f32.mxu1 %v1021_v41  ;;  %v1022_v54 = vmax.f32 %v1004_v43, 0.0 }
 0x667   :  { %v1009_v49 = vpop.f32.mrf.mxu0  ;;  %1132 = vmatmul.mubr.f32.vlgmr.msra.gmra.mxu1 %v1020_v42 }
 0x668   :  { %v1023_v51 = vmax.f32 %v1006_v45, 0.0  ;;  %1439 = vmatpush3.msra.mxu1 %v1175_v29  ;;  %v1010_v55 = vadd.f32 %v1009_v49, %v924_v60 }
 0x669   :  { %v1011_v56 = vpop.f32.mrf.mxu0  ;;  %1440 = vmatprep.subr.mxu1 %v1174_v48 }
 0x66a   :  { %v1012_v61 = vadd.f32 %v1011_v56, %v928_v35  ;;  %1136 = vmatprep.mubr.f32.mxu1 %v1023_v51  ;;  %1441 = vmatpush3.msra.mxu1 %v1174_v48  ;;  %v1024_v50 = vmax.f32 %v1010_v55, 0.0 }
 0x66b   :  { %v1015_v63 = vpop.f32.mrf.mxu0  ;;  %1137 = vmatmul.mubr.f32.gmra.mxu1 %v1022_v54  ;;  %1442 = vmatprep.subr.mxu1 %v1173_v52 }
 0x66c   :  { %v1025_v46 = vmax.f32 %v1012_v61, 0.0  ;;  %1443 = vmatpush3.msra.mxu1 %v1173_v52  ;;  %v1016_v0 = vadd.f32 %v1015_v63, %v924_v60 }
 0x66d   :  { %v1017_v53 = vpop.f32.mrf.mxu0  ;;  %1444 = vmatprep.subr.mxu1 %v1172_v62 }
 0x66e   :  { %v1018_v57 = vadd.f32 %v1017_v53, %v928_v35  ;;  %1141 = vmatprep.mubr.f32.mxu1 %v1025_v46  ;;  %1445 = vmatpush3.msra.mxu1 %v1172_v62  ;;  %v1026_v2 = vmax.f32 %v1016_v0, 0.0 }
 0x66f   :  { %1142 = vmatmul.mubr.f32.gmra.mxu1 %v1024_v50  ;;  %1446 = vmatprep.subr.mxu1 %v1171_v47 }
 0x670   :  { %v1027_v1 = vmax.f32 %v1018_v57, 0.0  ;;  %1447 = vmatpush3.msra.mxu1 %v1171_v47 }
 0x671   :  { %1448 = vmatprep.subr.mxu1 %v1170_v58 }
 0x672   :  { %1146 = vmatprep.mubr.f32.mxu1 %v1027_v1  ;;  %1449 = vmatpush3.msra.mxu1 %v1170_v58 }
 0x673   :  { %1147 = vmatmul.mubr.f32.gmra.mxu1 %v1026_v2  ;;  %1450 = vmatprep.subr.mxu1 %v1169_v59 }
 0x674   :  { %1451 = vmatpush3.msra.mxu1 %v1169_v59 }
 0x675   :  { %1452 = vmatprep.subr.mxu1 %v1168_v3 }
 0x676   :  { %1453 = vmatpush3.msra.mxu1 %v1168_v3 }
 0x677   :  { %1454 = vmatprep.subr.mxu1 %v1167_v4 }
 0x678   :  { %1455 = vmatpush3.msra.mxu1 %v1167_v4 }
 0x679   :  { %1456 = vmatprep.subr.mxu1 %v1166_v5 }
 0x67a   :  { %1457 = vmatpush3.msra.mxu1 %v1166_v5 }
 0x67b   :  { %1458 = vmatprep.subr.mxu1 %v1165_v6 }
 0x67c   :  { %1459 = vmatpush3.msra.mxu1 %v1165_v6 }
 0x67d   :  { %1460 = vmatprep.subr.mxu1 %v1164_v7 }
 0x67e   :  { %1461 = vmatpush3.msra.mxu1 %v1164_v7 }
 0x67f   :  { %1462 = vmatprep.subr.mxu1 %v1163_v8 }
 0x680   :  { %1463 = vmatpush3.msra.mxu1 %v1163_v8 }
 0x681   :  { %1464 = vmatprep.subr.mxu1 %v1162_v16 }
 0x682   :  { %1465 = vmatpush3.msra.mxu1 %v1162_v16 }
 0x683   :  { %1466 = vmatprep.subr.mxu1 %v1161_v18 }
 0x684   :  { %1467 = vmatpush3.msra.mxu1 %v1161_v18 }
 0x685   :  { %1468 = vmatprep.subr.mxu1 %v1160_v19 }
 0x686   :  { %1469 = vmatpush3.msra.mxu1 %v1160_v19 }
 0x727   :  { %v1370_v11 = vpop.f32.mrf.mxu1 }
 0x729   :  { %v1371_v10 = vpop.f32.mrf.mxu1 }
 0x72a   :  { %v1372_v13 = vadd.f32 %v1371_v10, %v1370_v11 }
 0x72b   :  { %v1373_v14 = vpop.f32.mrf.mxu1 }
 0x72c   :  { %v1134_v12 = vadd.f32 %v1372_v13, %v1315_v9 }
 0x72d   :  { %v1374_v31 = vpop.f32.mrf.mxu1 }
 0x72e   :  { %v1152_v15 = vmax.f32 %v1134_v12, 0.0  ;;  %v1375_v32 = vadd.f32 %v1374_v31, %v1373_v14 }
 0x72f   :  { %v1376_v33 = vpop.f32.mrf.mxu1 }
 0x730   :  { %1156 = vst [vmem:[#allocation23] sm:$0xff] %v1152_v15  ;;  %v1139_v20 = vadd.f32 %v1375_v32, %v1315_v9  ;;  %1470 = vmatprep.mubr.f32.mxu1 %v1152_v15 }
 0x731   :  { %v1377_v17 = vpop.f32.mrf.mxu1 }
 0x732   :  { %v1153_v34 = vmax.f32 %v1139_v20, 0.0  ;;  %v1378_v21 = vadd.f32 %v1377_v17, %v1376_v33 }
 0x733   :  { %v1379_v22 = vpop.f32.mrf.mxu1 }
 0x734   :  { %1157 = vst [vmem:[#allocation23 + $0x8] sm:$0xff] %v1153_v34  ;;  %v1144_v23 = vadd.f32 %v1378_v21, %v1315_v9  ;;  %1471 = vmatmul.mubr.f32.vlgmr.msra.gmra.mxu1 %v1153_v34 }
 0x735   :  { %v1380_v24 = vpop.f32.mrf.mxu1 }
 0x736   :  { %v1154_v25 = vmax.f32 %v1144_v23, 0.0  ;;  %v1381_v26 = vadd.f32 %v1380_v24, %v1379_v22 }
 0x738   :  { %1158 = vst [vmem:[#allocation23 + $0x10] sm:$0xff] %v1154_v25  ;;  %v1149_v27 = vadd.f32 %v1381_v26, %v1315_v9  ;;  %1473 = vmatprep.mubr.f32.mxu1 %v1154_v25 }
 0x73a   :  { %v1155_v28 = vmax.f32 %v1149_v27, 0.0 }
 0x73c   :  { %1159 = vst [vmem:[#allocation23 + $0x18] sm:$0xff] %v1155_v28  ;;  %1474 = vmatmul.mubr.f32.gmra.mxu1 %v1155_v28 }
 0x73d   :  { %1784 = shalt.err (!%p1781_p13)
}
 0x73e   :  { %1283 = dma.vmem_to_hbm [thread:$0]  %s1278_s13, 512, %s2168_s15, [#allocation4], %s1811_s26, %s1811_s26, %s1812_s27   ;;  %v1316_v29 = vld [vmem:[#allocation22] ss:$0 sm:$0xff] }
 0x7f4   :  { %v1472_v30 = vpop.f32.mrf.mxu1 }
 0x7f5   :  { %v1255_v60 = vadd.f32 %v1472_v30, %v1316_v29 }
 0x7f6   :  { %v1249_v35 = vpop.f32.mrf.mxu1 }
 0x7f7   :  { %1269 = vst [vmem:[%s2169_s16 + $0x8] sm:$0xff] %v1255_v60  ;;  %v1250_v36 = vadd.f32 %v1316_v29, %v1249_v35 }
 0x7f9   :  { %1268 = vst [vmem:[%s2169_s16] sm:$0xff] %v1250_v36 }
 0x7fc   :  { %v1475_v37 = vpop.f32.mrf.mxu1 }
 0x7fd   :  { %v1265_v38 = vadd.f32 %v1475_v37, %v1316_v29 }
 0x7fe   :  { %v1259_v39 = vpop.f32.mrf.mxu1 }
 0x7ff   :  { %1271 = vst [vmem:[%s2169_s16 + $0x18] sm:$0xff] %v1265_v38  ;;  %v1260_v40 = vadd.f32 %v1316_v29, %v1259_v39 }
 0x801   :  { %1270 = vst [vmem:[%s2169_s16 + $0x10] sm:$0xff] %v1260_v40 }
 0x802   :  { %1807 = dma.done.wait [#allocation4], 512  }
 0x803   :  { %1808 = vsyncadd [#allocation4], 4294966784 }
 0x804   :  { %1291 = vsyncpa [#allocation3], 1 }
 0x805   :  { %1292 = vsyncpa [#allocation6], 1 }
 0x806   :  { %1293 = vsyncpa [#allocation9], 1 }
 0x807   :  { %1294 = vsyncpa [#allocation12], 1 }
 0x808   :  { %1295 = vsyncpa [#allocation15], 1 }
 0x809   :  { %1296 = vsyncpa [#allocation18], 1 }
 0x80a   :  { %1297 = vsyncpa [#allocation21], 1 }
 0x80b   :  { %1298 = vsyncpa [#allocation4], 1 }

</bundles_post_ra>
